<compile_context>
chip_gen: v5e
topology: v5e:2x2
jax: 0.10.0
libtpu: 0.0.40
codegen_flags: <defaults>
</compile_context>

<pallas_src>
import functools

import jax
import jax.numpy as jnp
from jax.experimental import pallas as pl
from jax.experimental.pallas import tpu as pltpu

EPS = 1e-5
LANE = 128
SUBLANE = 8
NEG_BIG = -1e30        # finite "minus infinity" for padded feature lanes
CAND_CHUNK = 8         # sparsemax candidate chunk (one sublane group)


def _round_up(n, m):
    return ((n + m - 1) // m) * m


def _pad2(a, rows, cols):
    a = jnp.asarray(a, jnp.float32)
    return jnp.pad(a, ((0, rows - a.shape[0]), (0, cols - a.shape[1])))


def _tpu_vmem_bytes():
    # Per-generation sizing (v5e/v6e: 128 MiB, v7x: 64 MiB per TensorCore).
    try:
        return int(pltpu.get_tpu_info().vmem_capacity_bytes)
    except Exception:
        return 64 * 1024 * 1024  # conservative fallback


def _pick_tiles(B):
    """Returns (Bp, TB1, TB23): padded batch, pass-1 tile, pass-2/3 tile."""
    B8 = _round_up(B, SUBLANE)
    if B8 <= 256:
        return B8, B8, B8                      # single tile per pass
    Bp = _round_up(B8, 512)
    TB23 = 512 if Bp >= 1024 else 256          # >=2 grid steps for megacore
    return Bp, 256, TB23


def _bn_affine(s, s2, n, gamma, beta):
    """Training-mode BatchNorm1d as an affine: y = v * scale + shift."""
    mu = s / n
    var = jnp.maximum(s2 / n - mu * mu, 0.0)   # biased batch variance
    scale = gamma * jax.lax.rsqrt(var + EPS)
    return scale, beta - mu * scale


# ------------------------------ Pallas kernels ------------------------------
def _attention_mask_kernel(x_ref, prior_ref, featm_ref, w_att_ref, b_att_ref,
                           mask_ref, v_ref, stats_ref, *, n_feat, cand_chunk):
    """scores = Linear(x); mask = sparsemax(scores*prior); v = x*mask (+ BN1 stats)."""
    x = x_ref[...]                        # (TB, Fp) f32
    prior = prior_ref[...]
    featm = featm_ref[...]                # (1, Fp): 1.0 real feature, 0.0 pad lane

    # attention_fc on the MXU: bf16 operands, f32 accumulation.
    scores = jnp.dot(x.astype(jnp.bfloat16), w_att_ref[...],
                     preferred_element_type=jnp.float32) + b_att_ref[...]
    z = jnp.where(featm > 0.0, scores * prior, NEG_BIG)

    # Exact sort-free sparsemax:
    #   tau = max_j (sum_{z_i >= z_j} z_i - 1) / #{z_i >= z_j}
    # chunked over REAL-feature candidates only (static Python loop -> static
    # lane slices; per-chunk temp is (TB, C, Fp), a few hundred KiB, instead
    # of the old (TB, Fp, Fp) spill monster).  The divide is kept exact so the
    # mask matches the 1e-4 reference tolerance (approx reciprocal ~2^-12).
    tb = x.shape[0]
    tau = jnp.full((tb, 1), NEG_BIG, dtype=jnp.float32)
    j0 = 0
    while j0 < n_feat:
        width = min(cand_chunk, n_feat - j0)
        zc = z[:, j0:j0 + width]                                     # (TB, C)
        gef = (z[:, None, :] >= zc[:, :, None]).astype(jnp.float32)  # (TB, C, Fp)
        cnt = jnp.sum(gef, axis=-1)                                  # (TB, C)
        ssum = jnp.sum(gef * z[:, None, :], axis=-1)                 # (TB, C)
        cand = (ssum - 1.0) / cnt
        tau = jnp.maximum(tau, jnp.max(cand, axis=-1, keepdims=True))
        j0 += width

    mask = jnp.maximum(z - tau, 0.0) * featm
    v = x * mask
    mask_ref[...] = mask
    v_ref[...] = v.astype(v_ref.dtype)           # bf16 storage for downstream MXU
    # Per-tile BN1 partials (padded batch rows have v == 0): one lane-dense
    # unmasked (1, 1, 2*Fp) store: [sum | sum of squares].
    stats_ref[...] = jnp.concatenate(
        [jnp.sum(v, axis=0, keepdims=True),
         jnp.sum(v * v, axis=0, keepdims=True)], axis=-1)[None]


def _bn2_stats_kernel(v_ref, rowm_ref, w_ref, b_ref, stats_ref):
    """h = v @ (BN1-folded W) + b; emit only per-tile BN2 partial sums."""
    h = jnp.dot(v_ref[...], w_ref[...],
                preferred_element_type=jnp.float32) + b_ref[...]
    rm = rowm_ref[...]                    # (TB, 1): 0.0 for padded batch rows
    stats_ref[...] = jnp.concatenate(
        [jnp.sum(h * rm, axis=0, keepdims=True),
         jnp.sum(h * h * rm, axis=0, keepdims=True)], axis=-1)[None]


def _glu_kernel(v_ref, w_ref, b_ref, out_ref):
    """Recompute hn = v @ (BN1+BN2-folded W) + b and apply the GLU."""
    fp = out_ref.shape[-1]
    hn = jnp.dot(v_ref[...], w_ref[...],
                 preferred_element_type=jnp.float32) + b_ref[...]
    out_ref[...] = hn[:, :fp] * jax.nn.sigmoid(hn[:, fp:])


# --------------------------------- wrapper ----------------------------------
@jax.jit
def tabnet_encoder(x, prior, params):
    B, F = x.shape
    Fp = _round_up(F, LANE)
    Bp, TB1, TB23 = _pick_tiles(B)
    nt1, nt23 = Bp // TB1, Bp // TB23

    f32 = jnp.float32
    xp = _pad2(x, Bp, Fp)
    pp = _pad2(prior, Bp, Fp)
    featm = (jnp.arange(Fp) < F).astype(f32)[None, :]   # (1, Fp) feature validity
    rowm = (jnp.arange(Bp) < B).astype(f32)[:, None]    # (Bp, 1) row validity

    w_att = _pad2(params["w_att"], Fp, Fp).astype(jnp.bfloat16)
    b_att = _pad2(params["b_att"], 1, Fp)
    # Fused GLU weight kept in f32 here: BN affines get folded into it below.
    w_ft = jnp.concatenate([_pad2(params["w_fta"], Fp, Fp),
                            _pad2(params["w_ftg"], Fp, Fp)], axis=1)
    b_ft = jnp.concatenate([_pad2(params["b_fta"], 1, Fp),
                            _pad2(params["b_ftg"], 1, Fp)], axis=1)
    bn1_g = _pad2(params["bn1_g"], 1, Fp)
    bn1_b = _pad2(params["bn1_b"], 1, Fp)
    bn2_g = jnp.concatenate([_pad2(params["bn2a_g"], 1, Fp),
                             _pad2(params["bn2g_g"], 1, Fp)], axis=1)
    bn2_b = jnp.concatenate([_pad2(params["bn2a_b"], 1, Fp),
                             _pad2(params["bn2g_b"], 1, Fp)], axis=1)

    vmem = _tpu_vmem_bytes()
    cparams = pltpu.CompilerParams(
        dimension_semantics=("parallel",),                 # megacore-friendly
        vmem_limit_bytes=min(64 << 20, max(32 << 20, vmem // 2)),
    )

    # ---- Pass 1: attention + sparsemax mask + x*mask (+ BN1 partials) ------
    act1 = pl.BlockSpec((TB1, Fp), lambda i: (i, 0))
    vec_f = pl.BlockSpec((1, Fp), lambda i: (0, 0))
    w_att_spec = pl.BlockSpec((Fp, Fp), lambda i: (0, 0))
    st1_spec = pl.BlockSpec((1, 1, 2 * Fp), lambda i: (i, 0, 0))

    mask_p, v_p, st1 = pl.pallas_call(
        functools.partial(_attention_mask_kernel, n_feat=F, cand_chunk=CAND_CHUNK),
        grid=(nt1,),
        in_specs=[act1, act1, vec_f, w_att_spec, vec_f],
        out_specs=(act1, act1, st1_spec),
        out_shape=(jax.ShapeDtypeStruct((Bp, Fp), f32),
                   jax.ShapeDtypeStruct((Bp, Fp), jnp.bfloat16),
                   jax.ShapeDtypeStruct((nt1, 1, 2 * Fp), f32)),
        compiler_params=cparams,
    )(xp, pp, featm, w_att, b_att)

    st1s = jnp.sum(st1[:, 0, :], axis=0, keepdims=True)           # (1, 2Fp)
    scale1, shift1 = _bn_affine(st1s[:, :Fp], st1s[:, Fp:], B, bn1_g, bn1_b)

    # Fold BN1 into the FeatureTransformer weights (tiny f32 JAX op):
    #   h = (v*scale1 + shift1) @ W + b = v @ (scale1^T * W) + (shift1 @ W + b)
    w1 = w_ft * scale1.T                                            # (Fp, 2Fp)
    b1 = shift1 @ w_ft + b_ft                                       # (1, 2Fp)
    w1_bf = w1.astype(jnp.bfloat16)

    # ---- Pass 2: BN2 partial statistics only (no h round trip to HBM) ------
    act2 = pl.BlockSpec((TB23, Fp), lambda i: (i, 0))
    rowm_spec = pl.BlockSpec((TB23, 1), lambda i: (i, 0))
    w_ft_spec = pl.BlockSpec((Fp, 2 * Fp), lambda i: (0, 0))
    vec_2f = pl.BlockSpec((1, 2 * Fp), lambda i: (0, 0))
    st2_spec = pl.BlockSpec((1, 1, 4 * Fp), lambda i: (i, 0, 0))

    st2 = pl.pallas_call(
        _bn2_stats_kernel,
        grid=(nt23,),
        in_specs=[act2, rowm_spec, w_ft_spec, vec_2f],
        out_specs=st2_spec,
        out_shape=jax.ShapeDtypeStruct((nt23, 1, 4 * Fp), f32),
        compiler_params=cparams,
    )(v_p, rowm, w1_bf, b1)

    st2s = jnp.sum(st2[:, 0, :], axis=0, keepdims=True)            # (1, 4Fp)
    scale2, shift2 = _bn_affine(st2s[:, :2 * Fp], st2s[:, 2 * Fp:], B,
                                bn2_g, bn2_b)

    # Fold BN2 on top:  hn = h*scale2 + shift2 = v @ (w1*scale2) + (b1*scale2+shift2)
    w2_bf = (w1 * scale2).astype(jnp.bfloat16)
    b2 = b1 * scale2 + shift2

    # ---- Pass 3: recompute hn with fully folded weights + GLU --------------
    out_p = pl.pallas_call(
        _glu_kernel,
        grid=(nt23,),
        in_specs=[act2, w_ft_spec, vec_2f],
        out_specs=act2,
        out_shape=jax.ShapeDtypeStruct((Bp, Fp), f32),
        compiler_params=cparams,
    )(v_p, w2_bf, b2)

    return out_p[:B, :F], mask_p[:B, :F]


# ----------------------- pure-JAX references (sanity) -----------------------
def _sparsemax_ref(z):
    zs = jnp.flip(jnp.sort(z, axis=-1), axis=-1)
    k = jnp.arange(1, z.shape[-1] + 1, dtype=jnp.float32)
    cs = jnp.cumsum(zs, axis=-1)
    cond = 1.0 + k * zs > cs
    kz = jnp.sum(cond.astype(jnp.int32), axis=-1, keepdims=True)
    tau = (jnp.take_along_axis(cs, kz - 1, axis=-1) - 1.0) / kz.astype(jnp.float32)
    return jnp.maximum(z - tau, 0.0)


def _reference(x, prior, p, mirror_kernel):
    """mirror_kernel=True mirrors the kernel's bf16 operands / BN-folded
    weights (f32 accumulation); False is the straight f32 math of the module."""
    bf = jnp.bfloat16
    cast = (lambda a: a.astype(bf)) if mirror_kernel else (lambda a: a)
    B, F = x.shape
    scores = jnp.dot(cast(x), cast(p["w_att"]),
                     preferred_element_type=jnp.float32) + p["b_att"]
    mask = _sparsemax_ref(scores * prior)
    v = x * mask
    scale1, shift1 = _bn_affine(jnp.sum(v, 0, keepdims=True),
                                jnp.sum(v * v, 0, keepdims=True),
                                B, p["bn1_g"], p["bn1_b"])
    w_ft = jnp.concatenate([p["w_fta"], p["w_ftg"]], axis=1)
    b_ft = jnp.concatenate([p["b_fta"], p["b_ftg"]], axis=1)
    g2 = jnp.concatenate([p["bn2a_g"], p["bn2g_g"]], axis=1)
    be2 = jnp.concatenate([p["bn2a_b"], p["bn2g_b"]], axis=1)
    if mirror_kernel:
        v_q = v.astype(bf)
        w1 = w_ft * scale1.T
        b1 = shift1 @ w_ft + b_ft
        h = jnp.dot(v_q, w1.astype(bf), preferred_element_type=jnp.float32) + b1
        scale2, shift2 = _bn_affine(jnp.sum(h, 0, keepdims=True),
                                    jnp.sum(h * h, 0, keepdims=True), B, g2, be2)
        hn = jnp.dot(v_q, (w1 * scale2).astype(bf),
                     preferred_element_type=jnp.float32) + (b1 * scale2 + shift2)
    else:
        xm = v * scale1 + shift1
        h = jnp.dot(xm, w_ft) + b_ft
        scale2, shift2 = _bn_affine(jnp.sum(h, 0, keepdims=True),
                                    jnp.sum(h * h, 0, keepdims=True), B, g2, be2)
        hn = h * scale2 + shift2
    return hn[:, :F] * jax.nn.sigmoid(hn[:, F:]), mask


def init_params(key, num_features):
    F = num_features
    ks = jax.random.split(key, 6)
    lim = 1.0 / jnp.sqrt(jnp.float32(F))   # PyTorch Linear default init range
    return {
        "w_att": jax.random.uniform(ks[0], (F, F), jnp.float32, -lim, lim),
        "b_att": jax.random.uniform(ks[1], (1, F), jnp.float32, -lim, lim),
        "bn1_g": jnp.ones((1, F), jnp.float32),
        "bn1_b": jnp.zeros((1, F), jnp.float32),
        # FeatureTransformer Linear(F -> 2F) split into GLU halves.
        "w_fta": jax.random.uniform(ks[2], (F, F), jnp.float32, -lim, lim),
        "b_fta": jax.random.uniform(ks[3], (1, F), jnp.float32, -lim, lim),
        "w_ftg": jax.random.uniform(ks[4], (F, F), jnp.float32, -lim, lim),
        "b_ftg": jax.random.uniform(ks[5], (1, F), jnp.float32, -lim, lim),
        "bn2a_g": jnp.ones((1, F), jnp.float32),
        "bn2a_b": jnp.zeros((1, F), jnp.float32),
        "bn2g_g": jnp.ones((1, F), jnp.float32),
        "bn2g_b": jnp.zeros((1, F), jnp.float32),
    }


if __name__ == "__main__":
    B, F = 8, 16
    key = jax.random.PRNGKey(0)
    kx, kp, kparam = jax.random.split(key, 3)

    x = jax.random.normal(kx, (B, F), jnp.float32)
    prior = jax.random.uniform(kp, (B, F), jnp.float32, 0.5, 1.5)
    params = init_params(kparam, F)

    transformed, mask = tabnet_encoder(x, prior, params)
    jax.block_until_ready((transformed, mask))
    assert transformed.shape == (B, F) and mask.shape == (B, F)

    # Tight check vs a reference mirroring the kernel's bf16 / BN-folded path.
    ref_t, ref_m = _reference(x, prior, params, mirror_kernel=True)
    assert jnp.allclose(mask, ref_m, atol=1e-4), "sparsemax mask mismatch"
    assert jnp.allclose(transformed, ref_t, atol=5e-3), "transformed output mismatch"

    # Looser sanity check of the mask against full-f32 math (sparsemax is a
    # simplex projection, hence 1-Lipschitz -> only bf16 operand rounding).
    _, ref_m32 = _reference(x, prior, params, mirror_kernel=False)
    assert jnp.allclose(mask, ref_m32, atol=2e-2), "mask vs f32 reference mismatch"

    print("KERNEL_OK")
</pallas_src>

<mosaic_0001>
module attributes {stable_mosaic.version = 11 : i64} {
  func.func @_attention_mask_kernel(%arg0: i32, %arg1: memref<8x128xf32, #tpu.memory_space<vmem>>, %arg2: memref<8x128xf32, #tpu.memory_space<vmem>>, %arg3: memref<1x128xf32, #tpu.memory_space<vmem>>, %arg4: memref<128x128xbf16, #tpu.memory_space<vmem>>, %arg5: memref<1x128xf32, #tpu.memory_space<vmem>>, %arg6: memref<8x128xf32, #tpu.memory_space<vmem>>, %arg7: memref<8x128xbf16, #tpu.memory_space<vmem>>, %arg8: memref<1x1x256xf32, #tpu.memory_space<vmem>>) attributes {dimension_semantics = [#tpu.dimension_semantics<parallel>], iteration_bounds = array<i64: 1>, scalar_prefetch = 0 : i64, scratch_operands = 0 : i64, tpu.core_type = #tpu.core_type<tc>, window_params = [{transform_indices = @transform_0, window_bounds = array<i64: 8, 128>}, {transform_indices = @transform_1, window_bounds = array<i64: 8, 128>}, {pipeline_mode = #tpu.pipeline_mode<synchronous>, transform_indices = @transform_2, window_bounds = array<i64: 1, 128>}, {pipeline_mode = #tpu.pipeline_mode<synchronous>, transform_indices = @transform_3, window_bounds = array<i64: 128, 128>}, {pipeline_mode = #tpu.pipeline_mode<synchronous>, transform_indices = @transform_4, window_bounds = array<i64: 1, 128>}, {transform_indices = @transform_5, window_bounds = array<i64: 8, 128>}, {transform_indices = @transform_6, window_bounds = array<i64: 8, 128>}, {transform_indices = @transform_7, window_bounds = array<i64: 1, 1, 256>}]} {
    %c0 = arith.constant 0 : index
    %c0_0 = arith.constant 0 : index
    %0 = vector.load %arg1[%c0, %c0_0] : memref<8x128xf32, #tpu.memory_space<vmem>>, vector<8x128xf32>
    %c0_1 = arith.constant 0 : index
    %c0_2 = arith.constant 0 : index
    %1 = vector.load %arg2[%c0_1, %c0_2] : memref<8x128xf32, #tpu.memory_space<vmem>>, vector<8x128xf32>
    %c0_3 = arith.constant 0 : index
    %c0_4 = arith.constant 0 : index
    %2 = vector.load %arg3[%c0_3, %c0_4] : memref<1x128xf32, #tpu.memory_space<vmem>>, vector<1x128xf32>
    %3 = arith.truncf %0 : vector<8x128xf32> to vector<8x128xbf16>
    %c0_5 = arith.constant 0 : index
    %c0_6 = arith.constant 0 : index
    %4 = vector.load %arg4[%c0_5, %c0_6] : memref<128x128xbf16, #tpu.memory_space<vmem>>, vector<128x128xbf16>
    %cst = arith.constant dense<0.000000e+00> : vector<8x128xf32>
    %5 = tpu.matmul %3, %4, %cst {dimension_numbers = #tpu.dot_dimension_numbers<[1], [0], [0], [1], [0, 0, 1, 1], [], []>} : vector<8x128xbf16>, vector<128x128xbf16>, vector<8x128xf32> -> vector<8x128xf32>
    %c0_7 = arith.constant 0 : index
    %c0_8 = arith.constant 0 : index
    %6 = vector.load %arg5[%c0_7, %c0_8] : memref<1x128xf32, #tpu.memory_space<vmem>>, vector<1x128xf32>
    %7 = vector.broadcast %6 : vector<1x128xf32> to vector<8x128xf32>
    %8 = arith.addf %5, %7 : vector<8x128xf32>
    %cst_9 = arith.constant 0.000000e+00 : f32
    %9 = vector.broadcast %cst_9 : f32 to vector<1x128xf32>
    %10 = arith.cmpf ogt, %2, %9 : vector<1x128xf32>
    %11 = arith.mulf %8, %1 : vector<8x128xf32>
    %cst_10 = arith.constant -1.000000e+30 : f32
    %12 = vector.shape_cast %10 : vector<1x128xi1> to vector<1x128xi1>
    %13 = vector.broadcast %12 : vector<1x128xi1> to vector<8x128xi1>
    %14 = vector.broadcast %cst_10 : f32 to vector<8x128xf32>
    %15 = arith.select %13, %11, %14 : vector<8x128xi1>, vector<8x128xf32>
    %cst_11 = arith.constant -1.000000e+30 : f32
    %16 = vector.broadcast %cst_11 : f32 to vector<8x1xf32>
    %17 = vector.extract_strided_slice %15 {offsets = [0, 0], sizes = [8, 8], strides = [1, 1]} : vector<8x128xf32> to vector<8x8xf32>
    %18 = vector.shape_cast %15 : vector<8x128xf32> to vector<8x1x128xf32>
    %19 = vector.shape_cast %17 : vector<8x8xf32> to vector<8x8x1xf32>
    %20 = vector.broadcast %18 : vector<8x1x128xf32> to vector<8x8x128xf32>
    %21 = vector.broadcast %19 : vector<8x8x1xf32> to vector<8x8x128xf32>
    %22 = arith.cmpf oge, %20, %21 : vector<8x8x128xf32>
    %23 = arith.extui %22 : vector<8x8x128xi1> to vector<8x8x128xi32>
    %24 = arith.sitofp %23 : vector<8x8x128xi32> to vector<8x8x128xf32>
    %cst_12 = arith.constant dense<0.000000e+00> : vector<8x8xf32>
    %25 = vector.multi_reduction <add>, %24, %cst_12 [2] : vector<8x8x128xf32> to vector<8x8xf32>
    %26 = vector.shape_cast %15 : vector<8x128xf32> to vector<8x1x128xf32>
    %27 = vector.broadcast %26 : vector<8x1x128xf32> to vector<8x8x128xf32>
    %28 = arith.mulf %24, %27 : vector<8x8x128xf32>
    %cst_13 = arith.constant dense<0.000000e+00> : vector<8x8xf32>
    %29 = vector.multi_reduction <add>, %28, %cst_13 [2] : vector<8x8x128xf32> to vector<8x8xf32>
    %cst_14 = arith.constant 1.000000e+00 : f32
    %30 = vector.broadcast %cst_14 : f32 to vector<8x8xf32>
    %31 = arith.subf %29, %30 : vector<8x8xf32>
    %32 = arith.divf %31, %25 : vector<8x8xf32>
    %cst_15 = arith.constant dense<0xFF800000> : vector<8xf32>
    %33 = vector.multi_reduction <maximumf>, %32, %cst_15 [1] : vector<8x8xf32> to vector<8xf32>
    %34 = vector.shape_cast %33 : vector<8xf32> to vector<8x1xf32>
    %35 = arith.maximumf %16, %34 : vector<8x1xf32>
    %36 = vector.extract_strided_slice %15 {offsets = [0, 8], sizes = [8, 8], strides = [1, 1]} : vector<8x128xf32> to vector<8x8xf32>
    %37 = vector.shape_cast %15 : vector<8x128xf32> to vector<8x1x128xf32>
    %38 = vector.shape_cast %36 : vector<8x8xf32> to vector<8x8x1xf32>
    %39 = vector.broadcast %37 : vector<8x1x128xf32> to vector<8x8x128xf32>
    %40 = vector.broadcast %38 : vector<8x8x1xf32> to vector<8x8x128xf32>
    %41 = arith.cmpf oge, %39, %40 : vector<8x8x128xf32>
    %42 = arith.extui %41 : vector<8x8x128xi1> to vector<8x8x128xi32>
    %43 = arith.sitofp %42 : vector<8x8x128xi32> to vector<8x8x128xf32>
    %cst_16 = arith.constant dense<0.000000e+00> : vector<8x8xf32>
    %44 = vector.multi_reduction <add>, %43, %cst_16 [2] : vector<8x8x128xf32> to vector<8x8xf32>
    %45 = vector.shape_cast %15 : vector<8x128xf32> to vector<8x1x128xf32>
    %46 = vector.broadcast %45 : vector<8x1x128xf32> to vector<8x8x128xf32>
    %47 = arith.mulf %43, %46 : vector<8x8x128xf32>
    %cst_17 = arith.constant dense<0.000000e+00> : vector<8x8xf32>
    %48 = vector.multi_reduction <add>, %47, %cst_17 [2] : vector<8x8x128xf32> to vector<8x8xf32>
    %cst_18 = arith.constant 1.000000e+00 : f32
    %49 = vector.broadcast %cst_18 : f32 to vector<8x8xf32>
    %50 = arith.subf %48, %49 : vector<8x8xf32>
    %51 = arith.divf %50, %44 : vector<8x8xf32>
    %cst_19 = arith.constant dense<0xFF800000> : vector<8xf32>
    %52 = vector.multi_reduction <maximumf>, %51, %cst_19 [1] : vector<8x8xf32> to vector<8xf32>
    %53 = vector.shape_cast %52 : vector<8xf32> to vector<8x1xf32>
    %54 = arith.maximumf %35, %53 : vector<8x1xf32>
    %55 = vector.broadcast %54 : vector<8x1xf32> to vector<8x128xf32>
    %56 = arith.subf %15, %55 : vector<8x128xf32>
    %cst_20 = arith.constant 0.000000e+00 : f32
    %57 = vector.broadcast %cst_20 : f32 to vector<8x128xf32>
    %58 = arith.maximumf %56, %57 : vector<8x128xf32>
    %59 = vector.broadcast %2 : vector<1x128xf32> to vector<8x128xf32>
    %60 = arith.mulf %58, %59 : vector<8x128xf32>
    %61 = arith.mulf %0, %60 : vector<8x128xf32>
    %c0_21 = arith.constant 0 : index
    %c0_22 = arith.constant 0 : index
    %62 = vector.load %arg6[%c0_21, %c0_22] : memref<8x128xf32, #tpu.memory_space<vmem>>, vector<8x128xf32>
    tpu.vector_store %arg6[%c0_21, %c0_22], %60 {strides = array<i32>} : memref<8x128xf32, #tpu.memory_space<vmem>>, vector<8x128xf32>,
    %63 = arith.truncf %61 : vector<8x128xf32> to vector<8x128xbf16>
    %c0_23 = arith.constant 0 : index
    %c0_24 = arith.constant 0 : index
    %64 = vector.load %arg7[%c0_23, %c0_24] : memref<8x128xbf16, #tpu.memory_space<vmem>>, vector<8x128xbf16>
    tpu.vector_store %arg7[%c0_23, %c0_24], %63 {strides = array<i32>} : memref<8x128xbf16, #tpu.memory_space<vmem>>, vector<8x128xbf16>,
    %cst_25 = arith.constant dense<0.000000e+00> : vector<128xf32>
    %65 = vector.multi_reduction <add>, %61, %cst_25 [0] : vector<8x128xf32> to vector<128xf32>
    %66 = vector.shape_cast %65 : vector<128xf32> to vector<1x128xf32>
    %67 = arith.mulf %61, %61 : vector<8x128xf32>
    %cst_26 = arith.constant dense<0.000000e+00> : vector<128xf32>
    %68 = vector.multi_reduction <add>, %67, %cst_26 [0] : vector<8x128xf32> to vector<128xf32>
    %69 = vector.shape_cast %68 : vector<128xf32> to vector<1x128xf32>
    %70 = tpu.concatenate %66, %69 in 1 : vector<1x128xf32>, vector<1x128xf32> -> vector<1x256xf32>
    %71 = vector.shape_cast %70 : vector<1x256xf32> to vector<1x1x256xf32>
    %c0_27 = arith.constant 0 : index
    %c0_28 = arith.constant 0 : index
    %c0_29 = arith.constant 0 : index
    %72 = vector.load %arg8[%c0_27, %c0_28, %c0_29] : memref<1x1x256xf32, #tpu.memory_space<vmem>>, vector<1x1x256xf32>
    tpu.vector_store %arg8[%c0_27, %c0_28, %c0_29], %71 {strides = array<i32>} : memref<1x1x256xf32, #tpu.memory_space<vmem>>, vector<1x1x256xf32>,
    return
  }
  func.func @transform_0(%arg0: i32) -> (i32, i32) {
    %c0_i32 = arith.constant 0 : i32
    %c0_i32_0 = arith.constant 0 : i32
    return %arg0, %c0_i32 : i32, i32
  }
  func.func @transform_1(%arg0: i32) -> (i32, i32) {
    %c0_i32 = arith.constant 0 : i32
    %c0_i32_0 = arith.constant 0 : i32
    return %arg0, %c0_i32 : i32, i32
  }
  func.func @transform_2(%arg0: i32) -> (i32, i32) {
    %c0_i32 = arith.constant 0 : i32
    %c0_i32_0 = arith.constant 0 : i32
    %c0_i32_1 = arith.constant 0 : i32
    return %c0_i32, %c0_i32_0 : i32, i32
  }
  func.func @transform_3(%arg0: i32) -> (i32, i32) {
    %c0_i32 = arith.constant 0 : i32
    %c0_i32_0 = arith.constant 0 : i32
    %c0_i32_1 = arith.constant 0 : i32
    return %c0_i32, %c0_i32_0 : i32, i32
  }
  func.func @transform_4(%arg0: i32) -> (i32, i32) {
    %c0_i32 = arith.constant 0 : i32
    %c0_i32_0 = arith.constant 0 : i32
    %c0_i32_1 = arith.constant 0 : i32
    return %c0_i32, %c0_i32_0 : i32, i32
  }
  func.func @transform_5(%arg0: i32) -> (i32, i32) {
    %c0_i32 = arith.constant 0 : i32
    %c0_i32_0 = arith.constant 0 : i32
    return %arg0, %c0_i32 : i32, i32
  }
  func.func @transform_6(%arg0: i32) -> (i32, i32) {
    %c0_i32 = arith.constant 0 : i32
    %c0_i32_0 = arith.constant 0 : i32
    return %arg0, %c0_i32 : i32, i32
  }
  func.func @transform_7(%arg0: i32) -> (i32, i32, i32) {
    %c0_i32 = arith.constant 0 : i32
    %c0_i32_0 = arith.constant 0 : i32
    %c0_i32_1 = arith.constant 0 : i32
    return %arg0, %c0_i32, %c0_i32_0 : i32, i32, i32
  }
}

module attributes {stable_mosaic.version = 11 : i64} {
  func.func @_bn2_stats_kernel(%arg0: i32, %arg1: memref<8x128xbf16, #tpu.memory_space<vmem>>, %arg2: memref<8x1xf32, #tpu.memory_space<vmem>>, %arg3: memref<128x256xbf16, #tpu.memory_space<vmem>>, %arg4: memref<1x256xf32, #tpu.memory_space<vmem>>, %arg5: memref<1x1x512xf32, #tpu.memory_space<vmem>>) attributes {dimension_semantics = [#tpu.dimension_semantics<parallel>], iteration_bounds = array<i64: 1>, scalar_prefetch = 0 : i64, scratch_operands = 0 : i64, tpu.core_type = #tpu.core_type<tc>, window_params = [{transform_indices = @transform_0, window_bounds = array<i64: 8, 128>}, {transform_indices = @transform_1, window_bounds = array<i64: 8, 1>}, {pipeline_mode = #tpu.pipeline_mode<synchronous>, transform_indices = @transform_2, window_bounds = array<i64: 128, 256>}, {pipeline_mode = #tpu.pipeline_mode<synchronous>, transform_indices = @transform_3, window_bounds = array<i64: 1, 256>}, {transform_indices = @transform_4, window_bounds = array<i64: 1, 1, 512>}]} {
    %c0 = arith.constant 0 : index
    %c0_0 = arith.constant 0 : index
    %0 = vector.load %arg1[%c0, %c0_0] : memref<8x128xbf16, #tpu.memory_space<vmem>>, vector<8x128xbf16>
    %c0_1 = arith.constant 0 : index
    %c0_2 = arith.constant 0 : index
    %1 = vector.load %arg3[%c0_1, %c0_2] : memref<128x256xbf16, #tpu.memory_space<vmem>>, vector<128x256xbf16>
    %cst = arith.constant dense<0.000000e+00> : vector<8x256xf32>
    %2 = tpu.matmul %0, %1, %cst {dimension_numbers = #tpu.dot_dimension_numbers<[1], [0], [0], [1], [0, 0, 1, 1], [], []>} : vector<8x128xbf16>, vector<128x256xbf16>, vector<8x256xf32> -> vector<8x256xf32>
    %c0_3 = arith.constant 0 : index
    %c0_4 = arith.constant 0 : index
    %3 = vector.load %arg4[%c0_3, %c0_4] : memref<1x256xf32, #tpu.memory_space<vmem>>, vector<1x256xf32>
    %4 = vector.broadcast %3 : vector<1x256xf32> to vector<8x256xf32>
    %5 = arith.addf %2, %4 : vector<8x256xf32>
    %c0_5 = arith.constant 0 : index
    %c0_6 = arith.constant 0 : index
    %6 = vector.load %arg2[%c0_5, %c0_6] : memref<8x1xf32, #tpu.memory_space<vmem>>, vector<8x1xf32>
    %7 = vector.broadcast %6 : vector<8x1xf32> to vector<8x256xf32>
    %8 = arith.mulf %5, %7 : vector<8x256xf32>
    %cst_7 = arith.constant dense<0.000000e+00> : vector<256xf32>
    %9 = vector.multi_reduction <add>, %8, %cst_7 [0] : vector<8x256xf32> to vector<256xf32>
    %10 = vector.shape_cast %9 : vector<256xf32> to vector<1x256xf32>
    %11 = arith.mulf %5, %5 : vector<8x256xf32>
    %12 = vector.broadcast %6 : vector<8x1xf32> to vector<8x256xf32>
    %13 = arith.mulf %11, %12 : vector<8x256xf32>
    %cst_8 = arith.constant dense<0.000000e+00> : vector<256xf32>
    %14 = vector.multi_reduction <add>, %13, %cst_8 [0] : vector<8x256xf32> to vector<256xf32>
    %15 = vector.shape_cast %14 : vector<256xf32> to vector<1x256xf32>
    %16 = tpu.concatenate %10, %15 in 1 : vector<1x256xf32>, vector<1x256xf32> -> vector<1x512xf32>
    %17 = vector.shape_cast %16 : vector<1x512xf32> to vector<1x1x512xf32>
    %c0_9 = arith.constant 0 : index
    %c0_10 = arith.constant 0 : index
    %c0_11 = arith.constant 0 : index
    %18 = vector.load %arg5[%c0_9, %c0_10, %c0_11] : memref<1x1x512xf32, #tpu.memory_space<vmem>>, vector<1x1x512xf32>
    tpu.vector_store %arg5[%c0_9, %c0_10, %c0_11], %17 {strides = array<i32>} : memref<1x1x512xf32, #tpu.memory_space<vmem>>, vector<1x1x512xf32>,
    return
  }
  func.func @transform_0(%arg0: i32) -> (i32, i32) {
    %c0_i32 = arith.constant 0 : i32
    %c0_i32_0 = arith.constant 0 : i32
    return %arg0, %c0_i32 : i32, i32
  }
  func.func @transform_1(%arg0: i32) -> (i32, i32) {
    %c0_i32 = arith.constant 0 : i32
    %c0_i32_0 = arith.constant 0 : i32
    return %arg0, %c0_i32 : i32, i32
  }
  func.func @transform_2(%arg0: i32) -> (i32, i32) {
    %c0_i32 = arith.constant 0 : i32
    %c0_i32_0 = arith.constant 0 : i32
    %c0_i32_1 = arith.constant 0 : i32
    return %c0_i32, %c0_i32_0 : i32, i32
  }
  func.func @transform_3(%arg0: i32) -> (i32, i32) {
    %c0_i32 = arith.constant 0 : i32
    %c0_i32_0 = arith.constant 0 : i32
    %c0_i32_1 = arith.constant 0 : i32
    return %c0_i32, %c0_i32_0 : i32, i32
  }
  func.func @transform_4(%arg0: i32) -> (i32, i32, i32) {
    %c0_i32 = arith.constant 0 : i32
    %c0_i32_0 = arith.constant 0 : i32
    %c0_i32_1 = arith.constant 0 : i32
    return %arg0, %c0_i32, %c0_i32_0 : i32, i32, i32
  }
}

module attributes {stable_mosaic.version = 11 : i64} {
  func.func @_glu_kernel(%arg0: i32, %arg1: memref<8x128xbf16, #tpu.memory_space<vmem>>, %arg2: memref<128x256xbf16, #tpu.memory_space<vmem>>, %arg3: memref<1x256xf32, #tpu.memory_space<vmem>>, %arg4: memref<8x128xf32, #tpu.memory_space<vmem>>) attributes {dimension_semantics = [#tpu.dimension_semantics<parallel>], iteration_bounds = array<i64: 1>, scalar_prefetch = 0 : i64, scratch_operands = 0 : i64, tpu.core_type = #tpu.core_type<tc>, window_params = [{transform_indices = @transform_0, window_bounds = array<i64: 8, 128>}, {pipeline_mode = #tpu.pipeline_mode<synchronous>, transform_indices = @transform_1, window_bounds = array<i64: 128, 256>}, {pipeline_mode = #tpu.pipeline_mode<synchronous>, transform_indices = @transform_2, window_bounds = array<i64: 1, 256>}, {transform_indices = @transform_3, window_bounds = array<i64: 8, 128>}]} {
    %c0 = arith.constant 0 : index
    %c0_0 = arith.constant 0 : index
    %0 = vector.load %arg1[%c0, %c0_0] : memref<8x128xbf16, #tpu.memory_space<vmem>>, vector<8x128xbf16>
    %c0_1 = arith.constant 0 : index
    %c0_2 = arith.constant 0 : index
    %1 = vector.load %arg2[%c0_1, %c0_2] : memref<128x256xbf16, #tpu.memory_space<vmem>>, vector<128x256xbf16>
    %cst = arith.constant dense<0.000000e+00> : vector<8x256xf32>
    %2 = tpu.matmul %0, %1, %cst {dimension_numbers = #tpu.dot_dimension_numbers<[1], [0], [0], [1], [0, 0, 1, 1], [], []>} : vector<8x128xbf16>, vector<128x256xbf16>, vector<8x256xf32> -> vector<8x256xf32>
    %c0_3 = arith.constant 0 : index
    %c0_4 = arith.constant 0 : index
    %3 = vector.load %arg3[%c0_3, %c0_4] : memref<1x256xf32, #tpu.memory_space<vmem>>, vector<1x256xf32>
    %4 = vector.broadcast %3 : vector<1x256xf32> to vector<8x256xf32>
    %5 = arith.addf %2, %4 : vector<8x256xf32>
    %6 = vector.extract_strided_slice %5 {offsets = [0, 0], sizes = [8, 128], strides = [1, 1]} : vector<8x256xf32> to vector<8x128xf32>
    %7 = vector.extract_strided_slice %5 {offsets = [0, 128], sizes = [8, 128], strides = [1, 1]} : vector<8x256xf32> to vector<8x128xf32>
    %8 = arith.negf %7 : vector<8x128xf32>
    %9 = math.exp %8 : vector<8x128xf32>
    %cst_5 = arith.constant 1.000000e+00 : f32
    %10 = vector.broadcast %cst_5 : f32 to vector<8x128xf32>
    %11 = arith.addf %10, %9 : vector<8x128xf32>
    %12 = arith.divf %10, %11 : vector<8x128xf32>
    %13 = arith.mulf %6, %12 : vector<8x128xf32>
    %c0_6 = arith.constant 0 : index
    %c0_7 = arith.constant 0 : index
    %14 = vector.load %arg4[%c0_6, %c0_7] : memref<8x128xf32, #tpu.memory_space<vmem>>, vector<8x128xf32>
    tpu.vector_store %arg4[%c0_6, %c0_7], %13 {strides = array<i32>} : memref<8x128xf32, #tpu.memory_space<vmem>>, vector<8x128xf32>,
    return
  }
  func.func @transform_0(%arg0: i32) -> (i32, i32) {
    %c0_i32 = arith.constant 0 : i32
    %c0_i32_0 = arith.constant 0 : i32
    return %arg0, %c0_i32 : i32, i32
  }
  func.func @transform_1(%arg0: i32) -> (i32, i32) {
    %c0_i32 = arith.constant 0 : i32
    %c0_i32_0 = arith.constant 0 : i32
    %c0_i32_1 = arith.constant 0 : i32
    return %c0_i32, %c0_i32_0 : i32, i32
  }
  func.func @transform_2(%arg0: i32) -> (i32, i32) {
    %c0_i32 = arith.constant 0 : i32
    %c0_i32_0 = arith.constant 0 : i32
    %c0_i32_1 = arith.constant 0 : i32
    return %c0_i32, %c0_i32_0 : i32, i32
  }
  func.func @transform_3(%arg0: i32) -> (i32, i32) {
    %c0_i32 = arith.constant 0 : i32
    %c0_i32_0 = arith.constant 0 : i32
    return %arg0, %c0_i32 : i32, i32
  }
}

</mosaic_0001>

<bundles_post_ra>
// kernel: tabnet_encoder.5
= control target key start
LH: loop header
LB: loop body
LE: loop exit
PB: predicated region body
PF: predicated region fallthrough
CT: control target
= control target key end

     0   :  { %s419_s0 = inlined_call_operand.vmem [shape: bf16[8,128], index: 0, kind: input, shape index: {}]   ;;  %s420_s1 = inlined_call_operand.vmem [shape: bf16[128,256], index: 1, kind: input, shape index: {}]   ;;  %s421_s2 = inlined_call_operand.vmem [shape: f32[1,256], index: 2, kind: input, shape index: {}]   ;;  %s422_s3 = inlined_call_operand.hbm [shape: f32[8,128], index: 3, kind: output, shape index: {}]  }
   0x1   :  { %v260_v0 = vld [vmem:[%s420_s1 + $0x74] sm:$0xf]  ;;  %v241_v1 = vld [vmem:[%s420_s1 + $0x78] sm:$0xf0]  ;;  %v258_v2 = vld [vmem:[%s420_s1 + $0x64] sm:$0xf] }
   0x2   :  { %v244_v3 = vor.u32 %v260_v0, %v241_v1  ;;  %v233_v4 = vld [vmem:[%s420_s1 + $0x68] sm:$0xf0]  ;;  %v239_v6 = vld [vmem:[%s420_s1 + $0x70] sm:$0xf]  ;;  %v261_v7 = vld [vmem:[%s420_s1 + $0x74] sm:$0xf0] }
   0x3   :  { %v236_v5 = vor.u32 %v258_v2, %v233_v4  ;;  %v256_v8 = vld [vmem:[%s420_s1 + $0x54] sm:$0xf]  ;;  %v225_v9 = vld [vmem:[%s420_s1 + $0x58] sm:$0xf0]  ;;  %v240_v10 = vor.u32 %v261_v7, %v239_v6  ;;  %v231_v11 = vld [vmem:[%s420_s1 + $0x60] sm:$0xf] }
   0x4   :  { %131 = vmatpush.bf16.msra.mxu1 %v244_v3  ;;  %v259_v12 = vld [vmem:[%s420_s1 + $0x64] sm:$0xf0]  ;;  %v228_v14 = vor.u32 %v256_v8, %v225_v9  ;;  %v223_v15 = vld [vmem:[%s420_s1 + $0x50] sm:$0xf]  ;;  %v257_v16 = vld [vmem:[%s420_s1 + $0x54] sm:$0xf0] }
   0x5   :  { %118 = vmatpush.bf16.msra.mxu0 %v240_v10  ;;  %v232_v13 = vor.u32 %v259_v12, %v231_v11  ;;  %v254_v17 = vld [vmem:[%s420_s1 + $0x44] sm:$0xf]  ;;  %v217_v18 = vld [vmem:[%s420_s1 + $0x48] sm:$0xf0]  ;;  %v224_v19 = vor.u32 %v257_v16, %v223_v15  ;;  %v215_v21 = vld [vmem:[%s420_s1 + $0x40] sm:$0xf] }
   0x6   :  { %v220_v20 = vor.u32 %v254_v17, %v217_v18  ;;  %v255_v22 = vld [vmem:[%s420_s1 + $0x44] sm:$0xf0] }
   0x8   :  { %132 = vmatpush.bf16.msra.mxu1 %v236_v5 }
   0x9   :  { %119 = vmatpush.bf16.msra.mxu0 %v232_v13 }
   0xc   :  { %133 = vmatpush.bf16.msra.mxu1 %v228_v14 }
   0xd   :  { %8 = vsyncpa [#allocation3], 0  ;;  %v252_v23 = vld [vmem:[%s420_s1 + $0x34] sm:$0xf]  ;;  %v209_v24 = vld [vmem:[%s420_s1 + $0x38] sm:$0xf0]  ;;  %120 = vmatpush.bf16.msra.mxu0 %v224_v19  ;;  %v216_v25 = vor.u32 %v255_v22, %v215_v21 }
   0xe   :  { %v212_v26 = vor.u32 %v252_v23, %v209_v24  ;;  %v207_v27 = vld [vmem:[%s420_s1 + $0x30] sm:$0xf]  ;;  %v253_v28 = vld [vmem:[%s420_s1 + $0x34] sm:$0xf0]  ;;  %v250_v29 = vld [vmem:[%s420_s1 + $0x24] sm:$0xf] }
   0xf   :  { %v201_v30 = vld [vmem:[%s420_s1 + $0x28] sm:$0xf0]  ;;  %v208_v31 = vor.u32 %v253_v28, %v207_v27  ;;  %v199_v33 = vld [vmem:[%s420_s1 + $0x20] sm:$0xf]  ;;  %v251_v34 = vld [vmem:[%s420_s1 + $0x24] sm:$0xf0] }
  0x10   :  { %134 = vmatpush.bf16.msra.mxu1 %v220_v20  ;;  %v204_v32 = vor.u32 %v250_v29, %v201_v30  ;;  %v248_v35 = vld [vmem:[%s420_s1 + $0x14] sm:$0xf]  ;;  %v193_v36 = vld [vmem:[%s420_s1 + $0x18] sm:$0xf0]  ;;  %v200_v37 = vor.u32 %v251_v34, %v199_v33  ;;  %v191_v39 = vld [vmem:[%s420_s1 + $0x10] sm:$0xf] }
  0x11   :  { %121 = vmatpush.bf16.msra.mxu0 %v216_v25  ;;  %v196_v38 = vor.u32 %v248_v35, %v193_v36  ;;  %v249_v40 = vld [vmem:[%s420_s1 + $0x14] sm:$0xf0]  ;;  %v246_v41 = vld [vmem:[%s420_s1 + $0x4] sm:$0xf]  ;;  %v185_v42 = vld [vmem:[%s420_s1 + $0x8] sm:$0xf0] }
  0x12   :  { %v192_v43 = vor.u32 %v249_v40, %v191_v39  ;;  %v188_v44 = vor.u32 %v246_v41, %v185_v42  ;;  %v183_v45 = vld [vmem:[%s420_s1] sm:$0xf]  ;;  %v247_v46 = vld [vmem:[%s420_s1 + $0x4] sm:$0xf0]  ;;  %s172_s27 = sshll.u32 %s422_s3, 4  ;;  %s173_s27 = int_to_ptr.hbm [resolvable:$true] %s172_s27 }
  0x13   :  { %v184_v47 = vor.u32 %v247_v46, %v183_v45  ;;  %v15_v48 = vld [vmem:[%s419_s0] sm:$0xf]  ;;  %s293_s0 = smov [#allocation2]  }
  0x14   :  { %135 = vmatpush.bf16.msra.mxu1 %v212_v26  ;;  %v32_v49 = vld [vmem:[%s421_s2] sm:$0x3]  ;;  %s170_s1 = sshll.u32 %s293_s0, 4  ;;  %s171_s1 = int_to_ptr.vmem [resolvable:$true] %s170_s1 }
  0x15   :  { %122 = vmatpush.bf16.msra.mxu0 %v208_v31  ;;  %v35_v50 = vperm.slane %v32_v49, 1  ;;  %v34_v63 = vperm.slane %v32_v49, 0 }
  0x18   :  { %136 = vmatpush.bf16.msra.mxu1 %v204_v32 }
  0x19   :  { %123 = vmatpush.bf16.msra.mxu0 %v200_v37 }
  0x1c   :  { %137 = vmatpush.bf16.msra.mxu1 %v196_v38 }
  0x1d   :  { %124 = vmatpush.bf16.msra.mxu0 %v192_v43 }
  0x20   :  { %138 = vmatpush.bf16.msra.mxu1 %v188_v44 }
  0x21   :  { %125 = vmatpush.bf16.msra.mxu0 %v184_v47 }
  0x23   :  { %139 = vmatmul.bf16.vlgmr.msra.gmra.mxu1 %v15_v48 }
  0x24   :  { %126 = vmatmul.bf16.vlgmr.msra.gmra.mxu0 %v15_v48 }
  0xa0   :  { %v140_v51 = vpop.f32.mrf.mxu1 }
  0xa1   :  { %v141_v52 = vadd.f32 %v140_v51, %v35_v50  ;;  %v127_v54 = vpop.f32.mrf.mxu0 }
  0xa2   :  { %v128_v4 = vadd.f32 %v127_v54, %v34_v63 }
  0xa3   :  { %v245_v53 = vmul.f32 -1.442695, %v141_v52 }
  0xa5   :  { %263 = vpow2.f32 %v245_v53 }
  0xa8   :  { %v142_v55 = vpop.f32.mrf.mxu1 }
  0xa9   :  { %v129_v57 = vpop.f32.mrf.mxu0 }
  0xab   :  { %v264_v56 = vpop.eup %263 }
  0xac   :  { %v147_v58 = vadd.f32 1.0, %v264_v56 }
  0xae   :  { %265 = vrcp.f32 %v147_v58  ;;  %v159_v62 = vand.u32 2147483648, %v147_v58  ;;  %v157_v1 = vand.u32 2147483647, %v147_v58  ;;  %vm153_vm1 = vweird.f32 %v147_v58 }
  0xb0   :  { %v160_v3 = vor.u32 1.1754944e-38, %v159_v62  ;;  %vm158_vm3 = vcmp.eq.f32.partialorder %v157_v1, 8.507059e+37 }
  0xb4   :  { %v266_v59 = vpop.eup %265 }
  0xb5   :  { %v149_v60 = vmul.f32 %v266_v59, %v147_v58  ;;  %vm154_vm0 = vweird.f32 %v266_v59 }
  0xb6   :  { %vm155_vm2 = vmor %vm153_vm1, %vm154_vm0 }
  0xb7   :  { %v150_v61 = vsub.f32 1.0, %v149_v60 }
  0xb9   :  { %v151_v0 = vmul.f32 %v266_v59, %v150_v61 }
  0xbb   :  { %v152_v2 = vadd.f32 %v266_v59, %v151_v0 }
  0xbd   :  { %v156_v5 = vsel %vm155_vm2, %v266_v59, %v152_v2 }
  0xbe   :  { %v161_v6 = vsel %vm158_vm3, %v160_v3, %v156_v5 }
  0xbf   :  { %v163_v7 = vmul.f32 %v161_v6, %v128_v4 }
  0xc1   :  { %164 = vst [vmem:[#allocation2] sm:$0xff] %v163_v7 }
  0xc2   :  { %175 = dma.vmem_to_hbm [thread:$0]  %s171_s1, 128, %s173_s27, [#allocation3]  }
  0xc3   :  { %291 = dma.done.wait [#allocation3], 128  }
  0xc4   :  { %292 = vsyncadd [#allocation3], 4294967168 }
  0xc5   :  { %180 = vsyncpa [#allocation3], 1 }

// kernel: tabnet_encoder.3
= control target key start
LH: loop header
LB: loop body
LE: loop exit
PB: predicated region body
PF: predicated region fallthrough
CT: control target
= control target key end

     0   :  { %v124_v1 = vlaneseq  ;;  %s1490_s0 = inlined_call_operand.vmem [shape: f32[8,128], index: 0, kind: input, shape index: {}]   ;;  %s1491_s1 = inlined_call_operand.vmem [shape: f32[8,128], index: 1, kind: input, shape index: {}]   ;;  %s1492_s2 = inlined_call_operand.vmem [shape: f32[1,128], index: 2, kind: input, shape index: {}]   ;;  %s1493_s3 = inlined_call_operand.vmem [shape: bf16[128,128], index: 3, kind: input, shape index: {}]   ;;  %s1494_s4 = inlined_call_operand.vmem [shape: f32[1,128], index: 4, kind: input, shape index: {}]   ;;  %s1495_s5 = inlined_call_operand.hbm [shape: f32[8,128], index: 5, kind: output, shape index: {0}]   ;;  %s1496_s6 = inlined_call_operand.vmem [shape: bf16[8,128], index: 6, kind: output, shape index: {1}]   ;;  %s1497_s7 = inlined_call_operand.vmem [shape: f32[1,1,256], index: 7, kind: output, shape index: {2}]  }
   0x1   :  { %v822_v0 = vld [vmem:[%s1493_s3 + $0x38] sm:$0xff]  ;;  %v821_v2 = vld [vmem:[%s1493_s3 + $0x30] sm:$0xff] }
   0x2   :  { %96 = vmatpush.bf16.msra.mxu0 %v822_v0  ;;  %v125_v3 = vshrl.u32 %v124_v1, 7 }
   0x3   :  { %13 = vsyncpa [#allocation3], 0  ;;  %v820_v4 = vld [vmem:[%s1493_s3 + $0x28] sm:$0xff]  ;;  %v819_v5 = vld [vmem:[%s1493_s3 + $0x20] sm:$0xff]  ;;  %v892_v13 = vmov 0   ;;  %v893_v35 = vmov 0.0  }
   0x4   :  { %828 = vset.pattern.permute.xlu2 %v125_v3  ;;  %827 = vset.pattern.permute.xlu1 %v125_v3  ;;  %v818_v6 = vld [vmem:[%s1493_s3 + $0x18] sm:$0xff]  ;;  %v817_v7 = vld [vmem:[%s1493_s3 + $0x10] sm:$0xff]  ;;  %v816_v8 = vld [vmem:[%s1493_s3 + $0x8] sm:$0xff]  ;;  %v427_v31 = vadd.s32 8, %v125_v3  ;;  %s894_s24 = smov [#allocation2]   ;;  %s734_s28 = sshll.u32 %s1495_s5, 4  ;;  %s735_s28 = int_to_ptr.hbm [resolvable:$true] %s734_s28 }
   0x5   :  { %826 = vset.pattern.permute.xlu0 %v125_v3  ;;  %v815_v9 = vld [vmem:[%s1493_s3] sm:$0xff]  ;;  %s732_s25 = sshll.u32 %s894_s24, 4  ;;  %s733_s25 = int_to_ptr.vmem [resolvable:$true] %s732_s25 }
   0x6   :  { %97 = vmatpush.bf16.msra.mxu0 %v821_v2  ;;  %v24_v10 = vld [vmem:[%s1490_s0] sm:$0xff] }
   0x7   :  { %v27_v11 = vpack.c.bf16 %v24_v10, %v24_v10  ;;  %v26_v12 = vld [vmem:[%s1492_s2] sm:$0x1] }
   0x8   :  { %vm109_vm0 = vcmp.gt.f32.partialorder %v26_v12, 0.0  ;;  %v831_v15 = vld [vmem:[%s1494_s4] ss:$0 sm:$0xff] }
   0x9   :  { %v111_v14 = vsel %vm109_vm0, 1, %v892_v13  ;;  %v25_v17 = vld [vmem:[%s1491_s1] sm:$0xff] }
   0xa   :  { %98 = vmatpush.bf16.msra.mxu0 %v820_v4  ;;  %v112_v16 = vperm.slane %v111_v14, 0 }
   0xc   :  { %vm113_vm1 = vcmp.eq.s32.totalorder %v112_v16, 1 }
   0xe   :  { %99 = vmatpush.bf16.msra.mxu0 %v819_v5 }
  0x12   :  { %100 = vmatpush.bf16.msra.mxu0 %v818_v6 }
  0x16   :  { %101 = vmatpush.bf16.msra.mxu0 %v817_v7 }
  0x1a   :  { %102 = vmatpush.bf16.msra.mxu0 %v816_v8 }
  0x1e   :  { %103 = vmatpush.bf16.msra.mxu0 %v815_v9 }
  0x21   :  { %104 = vmatmul.bf16.vlgmr.msra.gmra.mxu0 %v27_v11 }
  0x9e   :  { %v105_v18 = vpop.f32.mrf.mxu0 }
  0x9f   :  { %v106_v19 = vadd.f32 %v831_v15, %v105_v18 }
  0xa1   :  { %v110_v20 = vmul.f32 %v106_v19, %v25_v17 }
  0xa3   :  { %v972_v21 = vsel %vm113_vm1, %v110_v20, -1e+30 }
  0xa4   :  { %v151_v22 = vperm.slane %v972_v21, 4  ;;  %v137_v23 = vperm.slane %v972_v21, 2  ;;  %v977_v24 = vperm.slane %v972_v21, 0  ;;  %v158_v26 = vperm.slane %v972_v21, 5 }
  0xa5   :  { %v144_v27 = vperm.slane %v972_v21, 3  ;;  %v130_v28 = vperm.slane %v972_v21, 1  ;;  %v172_v29 = vperm.slane %v972_v21, 7  ;;  %v165_v30 = vperm.slane %v972_v21, 6 }
  0xa6   :  { %v107_v25 = vpop.f32.mrf.mxu0  ;;  %156 = vperm.xlu2 %828, %v151_v22   ;;  %142 = vperm.xlu1 %827, %v137_v23   ;;  %v117_v34 = vrot.slane %v972_v21, 2  ;;  %v118_v37 = vrot.slane %v972_v21, 3  ;;  %v116_v38 = vrot.slane %v972_v21, 1  ;;  %v122_v47 = vrot.slane %v972_v21, 7 }
  0xa7   :  { %128 = vperm.xlu0 %826, %v977_v24   ;;  %v119_v59 = vrot.slane %v972_v21, 4  ;;  %v121_v5 = vrot.slane %v972_v21, 6  ;;  %v120_v10 = vrot.slane %v972_v21, 5 }
  0xa8   :  { %v994_v39 = vperm.slane %v117_v34, 0  ;;  %v182_v40 = vperm.slane %v118_v37, 0  ;;  %v997_v42 = vperm.slane %v116_v38, 0  ;;  %v186_v49 = vperm.slane %v122_v47, 0 }
  0xa9   :  { %v183_v0 = vperm.slane %v119_v59, 0  ;;  %v185_v7 = vperm.slane %v121_v5, 0  ;;  %v184_v16 = vperm.slane %v120_v10, 0 }
  0xae   :  { %163 = vperm.xlu2 %828, %v158_v26   ;;  %149 = vperm.xlu1 %827, %v144_v27  }
  0xaf   :  { %135 = vperm.xlu0 %826, %v130_v28  }
  0xb6   :  { %177 = vperm.xlu1 %827, %v172_v29  }
  0xb7   :  { %170 = vperm.xlu0 %826, %v165_v30  }
  0xbe   :  { %830 = vset.pattern.permute.xlu1 %v427_v31 }
  0xbf   :  { %829 = vset.pattern.permute.xlu0 %v427_v31 }
  0xc6   :  { %435 = vperm.xlu1 %830, %v130_v28  }
  0xc7   :  { %429 = vperm.xlu0 %829, %v977_v24  }
  0xce   :  { %441 = vperm.xlu1 %830, %v137_v23  }
  0xcf   :  { %447 = vperm.xlu0 %829, %v144_v27  }
  0xd6   :  { %453 = vperm.xlu1 %830, %v151_v22  }
  0xd7   :  { %459 = vperm.xlu0 %829, %v158_v26  }
  0xde   :  { %465 = vperm.xlu1 %830, %v165_v30  }
  0xdf   :  { %471 = vperm.xlu0 %829, %v172_v29  }
 0x100   :  { %v157_v63 = vpop.permute.xlu2 %156 }
 0x101   :  { %vm199_vm10 = vcmp.ge.f32.partialorder %v183_v0, %v157_v63 }
 0x102   :  { %v787_v6 = vsel %vm199_vm10, 1.0, %v893_v35 }
 0x108   :  { %v164_v15 = vpop.permute.xlu2 %163 }
 0x109   :  { %vm200_vm15 = vcmp.ge.f32.partialorder %v184_v16, %v164_v15 }
 0x10a   :  { %v788_v19 = vsel %vm200_vm15, 1.0, %v893_v35 }
 0x10b   :  { %v240_v26 = vmul.f32 %v788_v19, %v184_v16 }
 0x118   :  { %v143_v32 = vpop.permute.xlu1 %142 }
 0x119   :  { %v129_v33 = vpop.permute.xlu0 %128  ;;  %vm197_vm3 = vcmp.ge.f32.partialorder %v994_v39, %v143_v32 }
 0x11a   :  { %vm195_vm2 = vcmp.ge.f32.partialorder %v977_v24, %v129_v33  ;;  %v785_v45 = vsel %vm197_vm3, 1.0, %v893_v35  ;;  %v239_v33 = vmul.f32 %v787_v6, %v183_v0 }
 0x11b   :  { %v989_v36 = vsel %vm195_vm2, 1.0, %v893_v35  ;;  %v237_v18 = vmul.f32 %v785_v45, %v994_v39 }
 0x11c   :  { %219 = vadd.xlane.f32.xlu2 %v989_v36  ;;  %v235_v29 = vmul.f32 %v989_v36, %v977_v24 }
 0x120   :  { %v150_v41 = vpop.permute.xlu1 %149 }
 0x121   :  { %vm198_vm4 = vcmp.ge.f32.partialorder %v182_v40, %v150_v41  ;;  %v136_v43 = vpop.permute.xlu0 %135 }
 0x122   :  { %vm196_vm5 = vcmp.ge.f32.partialorder %v997_v42, %v136_v43  ;;  %v786_v44 = vsel %vm198_vm4, 1.0, %v893_v35 }
 0x123   :  { %225 = vadd.xlane.f32.xlu0 %v786_v44  ;;  %v784_v46 = vsel %vm196_vm5, 1.0, %v893_v35  ;;  %v1004_v48 = vmul.f32 %v786_v44, %v182_v40 }
 0x124   :  { %223 = vadd.xlane.f32.xlu2 %v785_v45  ;;  %221 = vadd.xlane.f32.xlu1 %v784_v46  ;;  %v236_v17 = vmul.f32 %v784_v46, %v997_v42 }
 0x128   :  { %v178_v50 = vpop.permute.xlu1 %177 }
 0x129   :  { %vm202_vm6 = vcmp.ge.f32.partialorder %v186_v49, %v178_v50  ;;  %v171_v53 = vpop.permute.xlu0 %170 }
 0x12a   :  { %v790_v51 = vsel %vm202_vm6, 1.0, %v893_v35  ;;  %vm201_vm0 = vcmp.ge.f32.partialorder %v185_v7, %v171_v53 }
 0x12b   :  { %v1007_v52 = vmul.f32 %v790_v51, %v186_v49  ;;  %v789_v23 = vsel %vm201_vm0, 1.0, %v893_v35  ;;  %vm405_vm0 = vcmask 1041409  }
 0x12c   :  { %v241_v28 = vmul.f32 %v789_v23, %v185_v7 }
 0x138   :  { %v436_v54 = vpop.permute.xlu1 %435 }
 0x139   :  { %v430_v55 = vpop.permute.xlu0 %429  ;;  %vm474_vm8 = vcmp.ge.f32.partialorder %v997_v42, %v436_v54 }
 0x13a   :  { %vm473_vm7 = vcmp.ge.f32.partialorder %v977_v24, %v430_v55  ;;  %v800_v60 = vsel %vm474_vm8, 1.0, %v893_v35 }
 0x13b   :  { %v799_v56 = vsel %vm473_vm7, 1.0, %v893_v35  ;;  %v514_v22 = vmul.f32 %v800_v60, %v997_v42 }
 0x13c   :  { %497 = vadd.xlane.f32.xlu2 %v799_v56  ;;  %v513_v20 = vmul.f32 %v799_v56, %v977_v24 }
 0x140   :  { %v442_v57 = vpop.permute.xlu1 %441 }
 0x141   :  { %v448_v58 = vpop.permute.xlu0 %447  ;;  %vm475_vm12 = vcmp.ge.f32.partialorder %v994_v39, %v442_v57 }
 0x142   :  { %vm476_vm9 = vcmp.ge.f32.partialorder %v182_v40, %v448_v58  ;;  %v801_v12 = vsel %vm475_vm12, 1.0, %v893_v35 }
 0x143   :  { %v802_v61 = vsel %vm476_vm9, 1.0, %v893_v35  ;;  %v515_v25 = vmul.f32 %v801_v12, %v994_v39 }
 0x144   :  { %499 = vadd.xlane.f32.xlu2 %v800_v60  ;;  %503 = vadd.xlane.f32.xlu1 %v802_v61  ;;  %v516_v62 = vmul.f32 %v802_v61, %v182_v40 }
 0x148   :  { %v454_v2 = vpop.permute.xlu1 %453 }
 0x149   :  { %vm477_vm11 = vcmp.ge.f32.partialorder %v183_v0, %v454_v2  ;;  %v460_v3 = vpop.permute.xlu0 %459  ;;  %v1085_v2 = vand.u32 127, %v124_v1 }
 0x14a   :  { %v803_v4 = vsel %vm477_vm11, 1.0, %v893_v35  ;;  %vm478_vm1 = vcmp.ge.f32.partialorder %v184_v16, %v460_v3 }
 0x14b   :  { %505 = vadd.xlane.f32.xlu0 %v803_v4  ;;  %v804_v27 = vsel %vm478_vm1, 1.0, %v893_v35  ;;  %v517_v30 = vmul.f32 %v803_v4, %v183_v0 }
 0x14c   :  { %227 = vadd.xlane.f32.xlu2 %v787_v6  ;;  %233 = vadd.xlane.f32.xlu1 %v790_v51  ;;  %v518_v31 = vmul.f32 %v804_v27, %v184_v16 }
 0x150   :  { %v466_v8 = vpop.permute.xlu1 %465 }
 0x151   :  { %vm479_vm13 = vcmp.ge.f32.partialorder %v185_v7, %v466_v8  ;;  %v472_v9 = vpop.permute.xlu0 %471 }
 0x152   :  { %vm480_vm14 = vcmp.ge.f32.partialorder %v186_v49, %v472_v9  ;;  %v805_v11 = vsel %vm479_vm13, 1.0, %v893_v35 }
 0x153   :  { %509 = vadd.xlane.f32.xlu0 %v805_v11  ;;  %v806_v13 = vsel %vm480_vm14, 1.0, %v893_v35  ;;  %v519_v32 = vmul.f32 %v805_v11, %v185_v7 }
 0x154   :  { %501 = vadd.xlane.f32.xlu2 %v801_v12  ;;  %511 = vadd.xlane.f32.xlu1 %v806_v13  ;;  %v520_v14 = vmul.f32 %v806_v13, %v186_v49 }
 0x15b   :  { %245 = vadd.xlane.f32.xlu0 %v236_v17 }
 0x15c   :  { %229 = vadd.xlane.f32.xlu2 %v788_v19  ;;  %247 = vadd.xlane.f32.xlu1 %v237_v18 }
 0x163   :  { %521 = vadd.xlane.f32.xlu0 %v513_v20 }
 0x164   :  { %231 = vadd.xlane.f32.xlu2 %v789_v23  ;;  %523 = vadd.xlane.f32.xlu1 %v514_v22 }
 0x16b   :  { %525 = vadd.xlane.f32.xlu0 %v515_v25 }
 0x16c   :  { %507 = vadd.xlane.f32.xlu2 %v804_v27  ;;  %253 = vadd.xlane.f32.xlu1 %v240_v26 }
 0x173   :  { %255 = vadd.xlane.f32.xlu0 %v241_v28 }
 0x174   :  { %243 = vadd.xlane.f32.xlu2 %v235_v29  ;;  %529 = vadd.xlane.f32.xlu1 %v517_v30 }
 0x17b   :  { %531 = vadd.xlane.f32.xlu0 %v518_v31 }
 0x17c   :  { %249 = vadd.xlane.f32.xlu2 %v1004_v48  ;;  %533 = vadd.xlane.f32.xlu1 %v519_v32 }
 0x184   :  { %251 = vadd.xlane.f32.xlu2 %v239_v33 }
 0x18c   :  { %527 = vadd.xlane.f32.xlu2 %v516_v62 }
 0x18f   :  { %v1035_v34 = vpop.xlane.xlu2 %219 }
 0x190   :  { %v278_v11 = vand.u32 2147483648, %v1035_v34  ;;  %v276_v28 = vand.u32 2147483647, %v1035_v34  ;;  %vm272_vm14 = vweird.f32 %v1035_v34 }
 0x192   :  { %v1134_v33 = vor.u32 1.1754944e-38, %v278_v11 }
 0x194   :  { %257 = vadd.xlane.f32.xlu2 %v1007_v52 }
 0x196   :  { %v1041_v37 = vpop.xlane.xlu0 %225 }
 0x197   :  { %v224_v35 = vpop.xlane.xlu2 %223  ;;  %v1037_v24 = vpop.xlane.xlu1 %221 }
 0x198   :  { %833 = vrcp.f32 %v224_v35  ;;  %v306_v60 = vand.u32 2147483647, %v224_v35  ;;  %v308_v61 = vand.u32 2147483648, %v224_v35  ;;  %vm302_vm3 = vweird.f32 %v224_v35 }
 0x19a   :  { %vm307_vm5 = vcmp.eq.f32.partialorder %v306_v60, 8.507059e+37 }
 0x19c   :  { %535 = vadd.xlane.f32.xlu2 %v520_v14  ;;  %v309_v14 = vor.u32 1.1754944e-38, %v308_v61 }
 0x19e   :  { %v834_v40 = vpop.eup %833 }
 0x19f   :  { %v298_v42 = vmul.f32 %v834_v40, %v224_v35  ;;  %vm303_vm2 = vweird.f32 %v834_v40 }
 0x1a0   :  { %vm1088_vm4 = vmor %vm302_vm3, %vm303_vm2  ;;  %vm317_vm2 = vweird.f32 %v1041_v37 }
 0x1a1   :  { %v299_v47 = vsub.f32 1.0, %v298_v42 }
 0x1a3   :  { %v300_v51 = vmul.f32 %v834_v40, %v299_v47 }
 0x1a5   :  { %v301_v58 = vadd.f32 %v834_v40, %v300_v51 }
 0x1a7   :  { %v305_v9 = vsel %vm1088_vm4, %v834_v40, %v301_v58 }
 0x1a8   :  { %v310_v18 = vsel %vm307_vm5, %v309_v14, %v305_v9  ;;  %v291_v9 = vand.u32 2147483647, %v1037_v24  ;;  %vm287_vm5 = vweird.f32 %v1037_v24 }
 0x1af   :  { %v1039_v36 = vpop.xlane.xlu2 %497 }
 0x1b0   :  { %835 = vrcp.f32 %v1039_v36  ;;  %v556_v20 = vand.u32 2147483648, %v1039_v36  ;;  %vm550_vm8 = vweird.f32 %v1039_v36  ;;  %v554_v25 = vand.u32 2147483647, %v1039_v36 }
 0x1b2   :  { %v557_v40 = vor.u32 1.1754944e-38, %v556_v20  ;;  %vm555_vm12 = vcmp.eq.f32.partialorder %v554_v25, 8.507059e+37 }
 0x1b6   :  { %v1055_v45 = vpop.eup %835 }
 0x1b7   :  { %v1043_v38 = vpop.xlane.xlu2 %499  ;;  %v1045_v39 = vpop.xlane.xlu1 %503  ;;  %v546_v48 = vmul.f32 %v1055_v45, %v1039_v36  ;;  %vm551_vm6 = vweird.f32 %v1055_v45 }
 0x1b8   :  { %837 = vrcp.f32 %v1043_v38  ;;  %v571_v23 = vand.u32 2147483648, %v1043_v38  ;;  %vm565_vm9 = vweird.f32 %v1043_v38  ;;  %v569_v26 = vand.u32 2147483647, %v1043_v38  ;;  %vm1119_vm10 = vmor %vm550_vm8, %vm551_vm6 }
 0x1b9   :  { %839 = vrcp.f32 %v1035_v34  ;;  %v547_v55 = vsub.f32 1.0, %v546_v48 }
 0x1ba   :  { %841 = vrcp.f32 %v1041_v37  ;;  %vm570_vm13 = vcmp.eq.f32.partialorder %v569_v26, 8.507059e+37  ;;  %v323_v26 = vand.u32 2147483648, %v1041_v37 }
 0x1bb   :  { %843 = vrcp.f32 %v1037_v24  ;;  %v548_v63 = vmul.f32 %v1055_v45, %v547_v55 }
 0x1bd   :  { %v549_v17 = vadd.f32 %v1055_v45, %v548_v63 }
 0x1be   :  { %v1049_v41 = vpop.xlane.xlu0 %505  ;;  %v1058_v46 = vpop.eup %837 }
 0x1bf   :  { %v1051_v43 = vpop.xlane.xlu2 %227  ;;  %v1053_v44 = vpop.xlane.xlu1 %233  ;;  %v561_v49 = vmul.f32 %v1058_v46, %v1043_v38  ;;  %vm566_vm7 = vweird.f32 %v1058_v46  ;;  %v553_v32 = vsel %vm1119_vm10, %v1055_v45, %v549_v17  ;;  %vm407_vm10 = vcmask 1042434  }
 0x1c0   :  { %v1072_v54 = vpop.eup %839  ;;  %vm1127_vm11 = vmor %vm565_vm9, %vm566_vm7  ;;  %vm1177_vm7 = vcmp.eq.f32.partialorder %v276_v28, 8.507059e+37  ;;  %vm1190_vm9 = vcmp.eq.f32.partialorder %v291_v9, 8.507059e+37 }
 0x1c1   :  { %v562_v56 = vsub.f32 1.0, %v561_v49  ;;  %v268_v57 = vmul.f32 %v1072_v54, %v1035_v34  ;;  %v1077_v59 = vpop.eup %841  ;;  %v572_v49 = vor.u32 1.1754944e-38, %v571_v23  ;;  %vm273_vm4 = vweird.f32 %v1072_v54 }
 0x1c2   :  { %v1079_v62 = vpop.eup %843  ;;  %v1103_v12 = vmul.f32 %v1077_v59, %v1041_v37 }
 0x1c3   :  { %v563_v3 = vmul.f32 %v1058_v46, %v562_v56  ;;  %v269_v6 = vsub.f32 1.0, %v268_v57  ;;  %v283_v13 = vmul.f32 %v1079_v62, %v1037_v24  ;;  %v558_v56 = vsel %vm555_vm12, %v557_v40, %v553_v32 }
 0x1c4   :  { %v314_v36 = vsub.f32 1.0, %v1103_v12  ;;  %vm288_vm8 = vweird.f32 %v1079_v62  ;;  %vm318_vm12 = vweird.f32 %v1077_v59 }
 0x1c5   :  { %v564_v19 = vadd.f32 %v1058_v46, %v563_v3  ;;  %v270_v35 = vmul.f32 %v1072_v54, %v269_v6  ;;  %v284_v47 = vsub.f32 1.0, %v283_v13 }
 0x1c6   :  { %v1065_v50 = vpop.xlane.xlu0 %509  ;;  %v315_v12 = vmul.f32 %v1077_v59, %v314_v36 }
 0x1c7   :  { %v1068_v52 = vpop.xlane.xlu2 %501  ;;  %v1070_v53 = vpop.xlane.xlu1 %511  ;;  %v568_v38 = vsel %vm1127_vm11, %v1058_v46, %v564_v19  ;;  %v285_v4 = vmul.f32 %v1079_v62, %v284_v47  ;;  %v271_v19 = vadd.f32 %v1072_v54, %v270_v35  ;;  %vm1200_vm11 = vmor %vm272_vm14, %vm273_vm4  ;;  %vm595_vm4 = vweird.f32 %v1045_v39 }
 0x1c8   :  { %845 = vrcp.f32 %v1068_v52  ;;  %v573_v57 = vsel %vm570_vm13, %v572_v49, %v568_v38  ;;  %v586_v61 = vand.u32 2147483648, %v1068_v52  ;;  %vm580_vm1 = vweird.f32 %v1068_v52  ;;  %vm1218_vm14 = vmor %vm287_vm5, %vm288_vm8 }
 0x1c9   :  { %847 = vrcp.f32 %v1045_v39  ;;  %v584_v3 = vand.u32 2147483647, %v1068_v52  ;;  %v286_v23 = vadd.f32 %v1079_v62, %v285_v4  ;;  %v316_v38 = vadd.f32 %v1077_v59, %v315_v12 }
 0x1ca   :  { %v587_v14 = vor.u32 1.1754944e-38, %v586_v61  ;;  %v338_v4 = vand.u32 2147483648, %v1051_v43  ;;  %vm610_vm8 = vweird.f32 %v1049_v41 }
 0x1cb   :  { %vm585_vm6 = vcmp.eq.f32.partialorder %v584_v3, 8.507059e+37 }
 0x1cc   :  { %v1281_v31 = vor.u32 1.1754944e-38, %v338_v4 }
 0x1ce   :  { %v1082_v0 = vpop.eup %845  ;;  %v1092_v5 = vpop.xlane.xlu0 %245 }
 0x1cf   :  { %v576_v7 = vmul.f32 %v1082_v0, %v1068_v52  ;;  %v1096_v8 = vpop.xlane.xlu2 %229  ;;  %v248_v10 = vpop.xlane.xlu1 %247  ;;  %vm581_vm15 = vweird.f32 %v1082_v0  ;;  %v293_v52 = vand.u32 2147483648, %v1037_v24  ;;  %v792_v24 = vadd.f32 -1.0, %v1092_v5 }
 0x1d0   :  { %v793_v16 = vadd.f32 -1.0, %v248_v10  ;;  %849 = vrcp.f32 %v1096_v8  ;;  %vm1157_vm3 = vmor %vm580_vm1, %vm581_vm15  ;;  %v1168_v11 = vpop.eup %847  ;;  %vm332_vm1 = vweird.f32 %v1051_v43 }
 0x1d1   :  { %v577_v15 = vsub.f32 1.0, %v576_v7  ;;  %v294_v28 = vor.u32 1.1754944e-38, %v293_v52  ;;  %vm1244_vm15 = vmor %vm317_vm2, %vm318_vm12  ;;  %vm596_vm2 = vweird.f32 %v1168_v11 }
 0x1d2   :  { %v1113_v22 = vmul.f32 %v793_v16, %v310_v18  ;;  %v321_v16 = vand.u32 2147483647, %v1041_v37  ;;  %v320_v5 = vsel %vm1244_vm15, %v1077_v59, %v316_v38  ;;  %v616_v37 = vand.u32 2147483648, %v1049_v41 }
 0x1d3   :  { %v578_v29 = vmul.f32 %v1082_v0, %v577_v15  ;;  %vm640_vm15 = vweird.f32 %v1065_v50 }
 0x1d4   :  { %v399_v30 = vperm.slane %v1113_v22, %v1085_v2  ;;  %vm1206_vm13 = vcmp.eq.f32.partialorder %v321_v16, 8.507059e+37 }
 0x1d5   :  { %v579_v46 = vadd.f32 %v1082_v0, %v578_v29  ;;  %v591_v29 = vmul.f32 %v1168_v11, %v1045_v39 }
 0x1d6   :  { %v522_v42 = vpop.xlane.xlu0 %521  ;;  %v1181_v20 = vpop.eup %849 }
 0x1d7   :  { %v1141_v48 = vpop.xlane.xlu2 %231  ;;  %v524_v51 = vpop.xlane.xlu1 %523  ;;  %v807_v55 = vadd.f32 -1.0, %v522_v42  ;;  %v583_v10 = vsel %vm1157_vm3, %v1082_v0, %v579_v46  ;;  %v343_v47 = vmul.f32 %v1181_v20, %v1096_v8  ;;  %v324_v46 = vor.u32 1.1754944e-38, %v323_v26 }
 0x1d8   :  { %v808_v45 = vadd.f32 -1.0, %v524_v51  ;;  %851 = vrcp.f32 %v1141_v48  ;;  %v588_v25 = vsel %vm585_vm6, %v587_v14, %v583_v10  ;;  %v275_v51 = vsel %vm1200_vm11, %v1072_v54, %v271_v19 }
 0x1d9   :  { %v559_v58 = vmul.f32 %v807_v55, %v558_v56  ;;  %853 = vrcp.f32 %v1051_v43  ;;  %v290_v55 = vsel %vm1218_vm14, %v1079_v62, %v286_v23  ;;  %v592_v56 = vsub.f32 1.0, %v591_v29 }
 0x1da   :  { %v574_v60 = vmul.f32 %v808_v45, %v573_v57  ;;  %855 = vrcp.f32 %v1049_v41  ;;  %v344_v61 = vsub.f32 1.0, %v343_v47  ;;  %v280_v59 = vsel %vm1177_vm7, %v1134_v33, %v275_v51 }
 0x1db   :  { %v673_v63 = vperm.slane %v559_v58, %v1085_v2  ;;  %v593_v12 = vmul.f32 %v1168_v11, %v592_v56  ;;  %v325_v14 = vsel %vm1206_vm13, %v324_v46, %v320_v5  ;;  %v614_v23 = vand.u32 2147483647, %v1049_v41 }
 0x1dc   :  { %v674_v6 = vperm.slane %v574_v60, %v1085_v2  ;;  %v601_v60 = vand.u32 2147483648, %v1045_v39  ;;  %v345_v0 = vmul.f32 %v1181_v20, %v344_v61  ;;  %v1278_v26 = vor.u32 1.1754944e-38, %v616_v37 }
 0x1dd   :  { %v336_v29 = vand.u32 2147483647, %v1051_v43  ;;  %v1293_v34 = vadd.f32 %v1168_v11, %v593_v12  ;;  %vm348_vm5 = vweird.f32 %v1181_v20  ;;  %v368_v22 = vand.u32 2147483648, %v1141_v48 }
 0x1de   :  { %v681_v13 = vsel %vm405_vm0, %v674_v6, %v673_v63  ;;  %v526_v15 = vpop.xlane.xlu0 %525  ;;  %v1186_v27 = vpop.eup %851  ;;  %v295_v63 = vsel %vm1190_vm9, %v294_v28, %v290_v55  ;;  %vm347_vm9 = vweird.f32 %v1096_v8  ;;  %v366_v4 = vand.u32 2147483647, %v1141_v48 }
 0x1df   :  { %v1174_v17 = vpop.xlane.xlu2 %507  ;;  %v809_v18 = vadd.f32 -1.0, %v526_v15  ;;  %v1194_v35 = vpop.eup %853  ;;  %v358_v45 = vmul.f32 %v1186_v27, %v1141_v48  ;;  %v296_v6 = vmul.f32 %v792_v24, %v295_v63  ;;  %v599_v15 = vand.u32 2147483647, %v1045_v39  ;;  %vm1324_vm11 = vmor %vm347_vm9, %vm348_vm5 }
 0x1e0   :  { %v1210_v42 = vpop.eup %855  ;;  %857 = vrcp.f32 %v1174_v17  ;;  %v328_v57 = vmul.f32 %v1194_v35, %v1051_v43  ;;  %v1258_v9 = vpop.xlane.xlu1 %253  ;;  %vm333_vm3 = vweird.f32 %v1194_v35  ;;  %v346_v24 = vadd.f32 %v1181_v20, %v345_v0  ;;  %vm1376_vm9 = vmor %vm595_vm4, %vm596_vm2 }
 0x1e1   :  { %v589_v32 = vmul.f32 %v809_v18, %v588_v25  ;;  %859 = vrcp.f32 %v1053_v44  ;;  %v606_v62 = vmul.f32 %v1210_v42, %v1049_v41  ;;  %v359_v7 = vsub.f32 1.0, %v358_v45  ;;  %vm1350_vm14 = vmor %vm332_vm1, %vm333_vm3 }
 0x1e2   :  { %861 = vrcp.f32 %v1065_v50  ;;  %v1272_v25 = vor.u32 1.1754944e-38, %v601_v60  ;;  %v398_v28 = vperm.slane %v296_v6, %v1085_v2  ;;  %v353_v45 = vand.u32 2147483648, %v1096_v8 }
 0x1e3   :  { %v675_v49 = vperm.slane %v589_v32, %v1085_v2  ;;  %v607_v18 = vsub.f32 1.0, %v606_v62  ;;  %v360_v32 = vmul.f32 %v1186_v27, %v359_v7  ;;  %863 = vrcp.f32 %v1070_v53 }
 0x1e4   :  { %vm611_vm6 = vweird.f32 %v1210_v42  ;;  %vm1312_vm7 = vcmp.eq.f32.partialorder %v336_v29, 8.507059e+37  ;;  %v351_v60 = vand.u32 2147483647, %v1096_v8  ;;  %vm409_vm13 = vcmask 1043459  }
 0x1e5   :  { %v1238_v58 = vsel %vm407_vm10, %v675_v49, %v681_v13  ;;  %v329_v13 = vsub.f32 1.0, %v328_v57  ;;  %v608_v49 = vmul.f32 %v1210_v42, %v607_v18  ;;  %v361_v62 = vadd.f32 %v1186_v27, %v360_v32  ;;  %vm1403_vm4 = vmor %vm610_vm8, %vm611_vm6 }
 0x1e6   :  { %v1263_v10 = vpop.eup %857  ;;  %v256_v61 = vpop.xlane.xlu0 %255  ;;  %v644_v12 = vand.u32 2147483647, %v1065_v50  ;;  %vm352_vm5 = vcmp.eq.f32.partialorder %v351_v60, 8.507059e+37  ;;  %v369_v0 = vor.u32 1.1754944e-38, %v368_v22  ;;  %vm1364_vm1 = vcmp.eq.f32.partialorder %v614_v23, 8.507059e+37 }
 0x1e7   :  { %v244_v3 = vpop.xlane.xlu2 %243  ;;  %v1269_v16 = vpop.eup %859  ;;  %v621_v36 = vmul.f32 %v1263_v10, %v1174_v17  ;;  %v330_v40 = vmul.f32 %v1194_v35, %v329_v13  ;;  %vm626_vm3 = vweird.f32 %v1263_v10  ;;  %v598_v39 = vsel %vm1376_vm9, %v1168_v11, %v1293_v34 }
 0x1e8   :  { %v791_v52 = vadd.f32 -1.0, %v244_v3  ;;  %v1274_v33 = vpop.eup %861  ;;  %v373_v47 = vmul.f32 %v1269_v16, %v1053_v44  ;;  %v530_v37 = vpop.xlane.xlu1 %529  ;;  %vm625_vm2 = vweird.f32 %v1174_v17  ;;  %vm411_vm6 = vcmask 1044484  }
 0x1e9   :  { %v636_v51 = vmul.f32 %v1274_v33, %v1065_v50  ;;  %v622_v54 = vsub.f32 1.0, %v621_v36  ;;  %v1329_v7 = vpop.eup %863  ;;  %v609_v36 = vadd.f32 %v1210_v42, %v608_v49  ;;  %vm413_vm8 = vcmask 1045509  }
 0x1ea   :  { %v281_v19 = vmul.f32 %v791_v52, %v280_v59  ;;  %v374_v63 = vsub.f32 1.0, %v373_v47  ;;  %v350_v59 = vsel %vm1324_vm11, %v1181_v20, %v346_v24  ;;  %vm1386_vm11 = vcmp.eq.f32.partialorder %v644_v12, 8.507059e+37 }
 0x1eb   :  { %v637_v8 = vsub.f32 1.0, %v636_v51  ;;  %v623_v13 = vmul.f32 %v1263_v10, %v622_v54 }
 0x1ec   :  { %v397_v38 = vperm.slane %v281_v19, %v1085_v2  ;;  %v796_v19 = vadd.f32 -1.0, %v1258_v9 }
 0x1ed   :  { %v638_v43 = vmul.f32 %v1274_v33, %v637_v8  ;;  %v624_v51 = vadd.f32 %v1263_v10, %v623_v13 }
 0x1ee   :  { %v406_v55 = vsel %vm405_vm0, %v398_v28, %v397_v38  ;;  %vm363_vm0 = vweird.f32 %v1186_v27  ;;  %v797_v28 = vadd.f32 -1.0, %v256_v61  ;;  %v532_v34 = vpop.xlane.xlu0 %531  ;;  %v811_v61 = vadd.f32 -1.0, %v530_v37 }
 0x1ef   :  { %v250_v56 = vpop.xlane.xlu2 %249  ;;  %v408_v57 = vsel %vm407_vm10, %v399_v30, %v406_v55  ;;  %v331_v30 = vadd.f32 %v1194_v35, %v330_v40  ;;  %vm362_vm10 = vweird.f32 %v1141_v48  ;;  %v354_v48 = vor.u32 1.1754944e-38, %v353_v45 }
 0x1f0   :  { %v794_v5 = vadd.f32 -1.0, %v250_v56  ;;  %vm1336_vm12 = vmor %vm362_vm10, %vm363_vm0  ;;  %vm367_vm0 = vcmp.eq.f32.partialorder %v366_v4, 8.507059e+37  ;;  %v646_v40 = vand.u32 2147483648, %v1065_v50  ;;  %vm1382_vm10 = vcmp.eq.f32.partialorder %v599_v15, 8.507059e+37  ;;  %v534_v46 = vpop.xlane.xlu1 %533 }
 0x1f1   :  { %v355_v29 = vsel %vm352_vm5, %v354_v48, %v350_v59  ;;  %v631_v56 = vand.u32 2147483648, %v1174_v17  ;;  %v639_v11 = vadd.f32 %v1274_v33, %v638_v43  ;;  %v812_v4 = vadd.f32 -1.0, %v532_v34 }
 0x1f2   :  { %v326_v6 = vmul.f32 %v794_v5, %v325_v14  ;;  %v365_v14 = vsel %vm1336_vm12, %v1186_v27, %v361_v62  ;;  %v335_v27 = vsel %vm1350_vm14, %v1194_v35, %v331_v30  ;;  %v375_v35 = vmul.f32 %v1269_v16, %v374_v63  ;;  %vm1415_vm12 = vmor %vm625_vm2, %vm626_vm3 }
 0x1f3   :  { %v370_v9 = vsel %vm367_vm0, %v369_v0, %v365_v14  ;;  %v356_v24 = vmul.f32 %v796_v19, %v355_v29  ;;  %v629_v62 = vand.u32 2147483647, %v1174_v17  ;;  %v651_v17 = vmul.f32 %v1329_v7, %v1070_v53 }
 0x1f4   :  { %v400_v18 = vperm.slane %v326_v6, %v1085_v2  ;;  %v371_v54 = vmul.f32 %v797_v28, %v370_v9  ;;  %v632_v30 = vor.u32 1.1754944e-38, %v631_v56  ;;  %vm415_vm14 = vcmask 1046534  }
 0x1f5   :  { %v402_v22 = vperm.slane %v356_v24, %v1085_v2  ;;  %vm630_vm0 = vcmp.eq.f32.partialorder %v629_v62, 8.507059e+37  ;;  %v813_v8 = vadd.f32 -1.0, %v534_v46  ;;  %v647_v12 = vor.u32 1.1754944e-38, %v646_v40 }
 0x1f6   :  { %v410_v32 = vsel %vm409_vm13, %v400_v18, %v408_v57  ;;  %v340_v57 = vsel %vm1312_vm7, %v1281_v31, %v335_v27  ;;  %v613_v31 = vsel %vm1403_vm4, %v1210_v42, %v609_v36  ;;  %vm641_vm7 = vweird.f32 %v1274_v33 }
 0x1f7   :  { %v252_v47 = vpop.xlane.xlu2 %251  ;;  %v628_v42 = vsel %vm1415_vm12, %v1263_v10, %v624_v51  ;;  %v403_v63 = vperm.slane %v371_v54, %v1085_v2  ;;  %vm1429_vm5 = vmor %vm640_vm15, %vm641_vm7  ;;  %v618_v50 = vsel %vm1364_vm1, %v1278_v26, %v613_v31  ;;  %v652_v14 = vsub.f32 1.0, %v651_v17 }
 0x1f8   :  { %v795_v55 = vadd.f32 -1.0, %v252_v47  ;;  %v643_v6 = vsel %vm1429_vm5, %v1274_v33, %v639_v11  ;;  %v633_v37 = vsel %vm630_vm0, %v632_v30, %v628_v42  ;;  %v619_v18 = vmul.f32 %v811_v61, %v618_v50  ;;  %v865_v30 = vld [vmem:[%s1490_s0] sm:$0xff] }
 0x1f9   :  { %v603_v20 = vsel %vm1382_vm10, %v1272_v25, %v598_v39  ;;  %v376_v33 = vadd.f32 %v1269_v16, %v375_v35  ;;  %v648_v19 = vsel %vm1386_vm11, %v647_v12, %v643_v6  ;;  %v634_v0 = vmul.f32 %v812_v4, %v633_v37 }
 0x1fa   :  { %v341_v5 = vmul.f32 %v795_v55, %v340_v57  ;;  %vm378_vm15 = vweird.f32 %v1269_v16  ;;  %v649_v26 = vmul.f32 %v813_v8, %v648_v19  ;;  %v383_v29 = vand.u32 2147483648, %v1053_v44 }
 0x1fb   :  { %vm377_vm1 = vweird.f32 %v1053_v44  ;;  %v677_v25 = vperm.slane %v619_v18, %v1085_v2  ;;  %v653_v43 = vmul.f32 %v1329_v7, %v652_v14  ;;  %v678_v36 = vperm.slane %v634_v0, %v1085_v2 }
 0x1fc   :  { %v401_v60 = vperm.slane %v341_v5, %v1085_v2  ;;  %vm379_vm3 = vmor %vm377_vm1, %vm378_vm15  ;;  %v679_v40 = vperm.slane %v649_v26, %v1085_v2  ;;  %v384_v35 = vor.u32 1.1754944e-38, %v383_v29  ;;  %vm417_vm10 = vcmask 1047559  }
 0x1fd   :  { %v380_v9 = vsel %vm379_vm3, %v1269_v16, %v376_v33  ;;  %v654_v45 = vadd.f32 %v1329_v7, %v653_v43  ;;  %vm655_vm11 = vweird.f32 %v1070_v53  ;;  %v659_v56 = vand.u32 2147483647, %v1070_v53 }
 0x1fe   :  { %v412_v10 = vsel %vm411_vm6, %v401_v60, %v410_v32  ;;  %v381_v32 = vand.u32 2147483647, %v1053_v44  ;;  %vm420_vm2 = vcmask 64512   ;;  %v832_v60 = vld [vmem:[%s1492_s2] ss:$0 sm:$0xff]  ;;  %vm719_vm12 = vcmask 1040384  }
 0x1ff   :  { %v528_v59 = vpop.xlane.xlu2 %527  ;;  %v414_v52 = vsel %vm413_vm8, %v402_v22, %v412_v10  ;;  %vm660_vm7 = vcmp.eq.f32.partialorder %v659_v56, 8.507059e+37 }
 0x200   :  { %v810_v13 = vadd.f32 -1.0, %v528_v59  ;;  %v416_v48 = vsel %vm415_vm14, %v403_v63, %v414_v52  ;;  %vm382_vm9 = vcmp.eq.f32.partialorder %v381_v32, 8.507059e+37 }
 0x201   :  { %v385_v23 = vsel %vm382_vm9, %v384_v35, %v380_v9 }
 0x202   :  { %v604_v27 = vmul.f32 %v810_v13, %v603_v20 }
 0x204   :  { %v676_v28 = vperm.slane %v604_v27, %v1085_v2 }
 0x206   :  { %v683_v38 = vsel %vm409_vm13, %v676_v28, %v1238_v58  ;;  %vm656_vm13 = vweird.f32 %v1329_v7  ;;  %v661_v58 = vand.u32 2147483648, %v1070_v53 }
 0x207   :  { %v258_v47 = vpop.xlane.xlu2 %257  ;;  %v684_v51 = vsel %vm411_vm6, %v677_v25, %v683_v38  ;;  %vm657_vm4 = vmor %vm655_vm11, %vm656_vm13  ;;  %vm724_vm6 = vcmp.lt.s32.totalorder %v124_v1, 256 }
 0x208   :  { %v798_v55 = vadd.f32 -1.0, %v258_v47  ;;  %v685_v44 = vsel %vm413_vm8, %v678_v36, %v684_v51  ;;  %v658_v57 = vsel %vm657_vm4, %v1329_v7, %v654_v45  ;;  %v662_v54 = vor.u32 1.1754944e-38, %v661_v58 }
 0x209   :  { %v686_v49 = vsel %vm415_vm14, %v679_v40, %v685_v44 }
 0x20a   :  { %v386_v24 = vmul.f32 %v798_v55, %v385_v23  ;;  %v663_v31 = vsel %vm660_vm7, %v662_v54, %v658_v57 }
 0x20c   :  { %v404_v16 = vperm.slane %v386_v24, %v1085_v2 }
 0x20e   :  { %v418_v39 = vsel %vm417_vm10, %v404_v16, %v416_v48 }
 0x20f   :  { %v536_v15 = vpop.xlane.xlu2 %535  ;;  %v421_v62 = vsel %vm420_vm2, %v418_v39, -inf }
 0x210   :  { %v814_v5 = vadd.f32 -1.0, %v536_v15  ;;  %422 = vmax.xlane.f32.xlu0 %v421_v62 }
 0x212   :  { %v664_v11 = vmul.f32 %v814_v5, %v663_v31 }
 0x214   :  { %v680_v41 = vperm.slane %v664_v11, %v1085_v2 }
 0x216   :  { %v687_v34 = vsel %vm417_vm10, %v680_v41, %v686_v49 }
 0x217   :  { %v689_v17 = vsel %vm420_vm2, %v687_v34, -inf }
 0x218   :  { %690 = vmax.xlane.f32.xlu1 %v689_v17 }
 0x283   :  { %v423_v53 = vpop.xlane.xlu0 %422 }
 0x284   :  { %v424_v46 = vmax.f32 %v423_v53, -1e+30 }
 0x28b   :  { %v691_v42 = vpop.xlane.xlu1 %690 }
 0x28c   :  { %v692_v7 = vmax.f32 %v424_v46, %v691_v42 }
 0x28e   :  { %v693_v22 = vsub.f32 %v972_v21, %v692_v7 }
 0x290   :  { %v694_v2 = vmax.f32 %v693_v22, 0.0 }
 0x292   :  { %v698_v61 = vmul.f32 %v832_v60, %v694_v2 }
 0x294   :  { %v699_v63 = vmul.f32 %v865_v30, %v698_v61  ;;  %700 = vst [vmem:[#allocation2] sm:$0xff] %v698_v61 }
 0x295   :  { %737 = dma.vmem_to_hbm [thread:$0]  %s733_s25, 128, %s735_s28, [#allocation3]  }
 0x296   :  { %v701_v3 = vpack.c.bf16 %v699_v63, %v699_v63  ;;  %v703_v4 = vrot.slane %v699_v63, 4  ;;  %v709_v21 = vmul.f32 %v699_v63, %v699_v63 }
 0x298   :  { %702 = vst [vmem:[%s1496_s6] sm:$0xf] %v701_v3  ;;  %v704_v10 = vadd.f32 %v703_v4, %v699_v63  ;;  %v710_v6 = vrot.slane %v709_v21, 4 }
 0x29a   :  { %v705_v8 = vrot.slane %v704_v10, 2  ;;  %v711_v37 = vadd.f32 %v710_v6, %v709_v21 }
 0x29c   :  { %v706_v59 = vadd.f32 %v705_v8, %v704_v10  ;;  %v712_v52 = vrot.slane %v711_v37, 2 }
 0x29e   :  { %v713_v50 = vadd.f32 %v712_v52, %v711_v37  ;;  %v707_v12 = vrot.slane %v706_v59, 1 }
 0x2a0   :  { %v714_v13 = vrot.slane %v713_v50, 1  ;;  %v708_v14 = vadd.f32 %v707_v12, %v706_v59 }
 0x2a2   :  { %v715_v48 = vadd.f32 %v714_v13, %v713_v50 }
 0x2a4   :  { %v718_v18 = vrot.slane %v715_v48, 7 }
 0x2a6   :  { %v720_v20 = vsel %vm719_vm12, %v708_v14, %v718_v18 }
 0x2a7   :  { %726 = vst.msk [vmem:[%s1497_s7] sm:$0x3] %vm724_vm6, %v720_v20 }
 0x2a8   :  { %890 = dma.done.wait [#allocation3], 128  }
 0x2a9   :  { %891 = vsyncadd [#allocation3], 4294967168 }
 0x2aa   :  { %750 = vsyncpa [#allocation3], 1 }

// kernel: tabnet_encoder.4
= control target key start
LH: loop header
LB: loop body
LE: loop exit
PB: predicated region body
PF: predicated region fallthrough
CT: control target
= control target key end

     0   :  { %v287_v27 = vmov 0   ;;  %vm189_vm0 = vcmask 1040384   ;;  %vm191_vm1 = vcmask 1042434   ;;  %vm193_vm2 = vcmask 1041408   ;;  %s421_s2 = inlined_call_operand.vmem [shape: bf16[128,256], index: 2, kind: input, shape index: {}]   ;;  %s422_s1 = inlined_call_operand.vmem [shape: f32[8,1], index: 1, kind: input, shape index: {}]   ;;  %s423_s0 = inlined_call_operand.vmem [shape: bf16[8,128], index: 0, kind: input, shape index: {}]   ;;  %s424_s3 = inlined_call_operand.vmem [shape: f32[1,256], index: 3, kind: input, shape index: {}]   ;;  %s425_s4 = inlined_call_operand.vmem [shape: f32[1,1,512], index: 4, kind: output, shape index: {}]  }
   0x1   :  { %v263_v0 = vld [vmem:[%s421_s2 + $0x70] sm:$0xf]  ;;  %v284_v1 = vld [vmem:[%s421_s2 + $0x74] sm:$0xf0]  ;;  %v283_v2 = vld [vmem:[%s421_s2 + $0x74] sm:$0xf]  ;;  %286 = vset.pattern.permute.xlu0 %v287_v27 }
   0x2   :  { %v264_v3 = vor.u32 %v284_v1, %v263_v0  ;;  %v265_v4 = vld [vmem:[%s421_s2 + $0x78] sm:$0xf0]  ;;  %v255_v5 = vld [vmem:[%s421_s2 + $0x60] sm:$0xf]  ;;  %v282_v6 = vld [vmem:[%s421_s2 + $0x64] sm:$0xf0] }
   0x3   :  { %v268_v7 = vor.u32 %v283_v2, %v265_v4  ;;  %v281_v8 = vld [vmem:[%s421_s2 + $0x64] sm:$0xf]  ;;  %v257_v9 = vld [vmem:[%s421_s2 + $0x68] sm:$0xf0]  ;;  %v256_v10 = vor.u32 %v282_v6, %v255_v5  ;;  %v247_v12 = vld [vmem:[%s421_s2 + $0x50] sm:$0xf] }
   0x4   :  { %120 = vmatpush.bf16.msra.mxu0 %v264_v3  ;;  %v260_v11 = vor.u32 %v281_v8, %v257_v9  ;;  %v280_v13 = vld [vmem:[%s421_s2 + $0x54] sm:$0xf0]  ;;  %v279_v14 = vld [vmem:[%s421_s2 + $0x54] sm:$0xf]  ;;  %v249_v15 = vld [vmem:[%s421_s2 + $0x58] sm:$0xf0] }
   0x5   :  { %133 = vmatpush.bf16.msra.mxu1 %v268_v7  ;;  %v248_v16 = vor.u32 %v280_v13, %v247_v12  ;;  %v252_v17 = vor.u32 %v279_v14, %v249_v15  ;;  %v239_v18 = vld [vmem:[%s421_s2 + $0x40] sm:$0xf]  ;;  %v278_v19 = vld [vmem:[%s421_s2 + $0x44] sm:$0xf0]  ;;  %v277_v20 = vld [vmem:[%s421_s2 + $0x44] sm:$0xf] }
   0x6   :  { %v241_v21 = vld [vmem:[%s421_s2 + $0x48] sm:$0xf0]  ;;  %v240_v22 = vor.u32 %v278_v19, %v239_v18  ;;  %v146_v23 = vld [vmem:[%s422_s1] sm:$0xff]  ;;  %v231_v25 = vld [vmem:[%s421_s2 + $0x30] sm:$0xf] }
   0x7   :  { %v244_v24 = vor.u32 %v277_v20, %v241_v21  ;;  %v276_v26 = vld [vmem:[%s421_s2 + $0x34] sm:$0xf0]  ;;  %v275_v28 = vld [vmem:[%s421_s2 + $0x34] sm:$0xf]  ;;  %v233_v29 = vld [vmem:[%s421_s2 + $0x38] sm:$0xf0]  ;;  %149 = vperm.xlu0 %286, %v146_v23  }
   0x8   :  { %121 = vmatpush.bf16.msra.mxu0 %v256_v10  ;;  %v232_v30 = vor.u32 %v276_v26, %v231_v25  ;;  %v236_v31 = vor.u32 %v275_v28, %v233_v29  ;;  %v223_v32 = vld [vmem:[%s421_s2 + $0x20] sm:$0xf]  ;;  %v274_v33 = vld [vmem:[%s421_s2 + $0x24] sm:$0xf0]  ;;  %v273_v34 = vld [vmem:[%s421_s2 + $0x24] sm:$0xf] }
   0x9   :  { %134 = vmatpush.bf16.msra.mxu1 %v260_v11  ;;  %v225_v35 = vld [vmem:[%s421_s2 + $0x28] sm:$0xf0]  ;;  %v224_v36 = vor.u32 %v274_v33, %v223_v32  ;;  %v215_v38 = vld [vmem:[%s421_s2 + $0x10] sm:$0xf]  ;;  %v272_v39 = vld [vmem:[%s421_s2 + $0x14] sm:$0xf0] }
   0xa   :  { %v228_v37 = vor.u32 %v273_v34, %v225_v35  ;;  %v271_v40 = vld [vmem:[%s421_s2 + $0x14] sm:$0xf]  ;;  %v217_v41 = vld [vmem:[%s421_s2 + $0x18] sm:$0xf0]  ;;  %v216_v42 = vor.u32 %v272_v39, %v215_v38  ;;  %v207_v44 = vld [vmem:[%s421_s2] sm:$0xf] }
   0xb   :  { %v220_v43 = vor.u32 %v271_v40, %v217_v41  ;;  %v270_v45 = vld [vmem:[%s421_s2 + $0x4] sm:$0xf0]  ;;  %v269_v46 = vld [vmem:[%s421_s2 + $0x4] sm:$0xf]  ;;  %v209_v47 = vld [vmem:[%s421_s2 + $0x8] sm:$0xf0] }
   0xc   :  { %122 = vmatpush.bf16.msra.mxu0 %v248_v16  ;;  %v208_v48 = vor.u32 %v270_v45, %v207_v44  ;;  %v212_v49 = vor.u32 %v269_v46, %v209_v47  ;;  %v17_v50 = vld [vmem:[%s423_s0] sm:$0xf] }
   0xd   :  { %135 = vmatpush.bf16.msra.mxu1 %v252_v17  ;;  %v34_v51 = vld [vmem:[%s424_s3] sm:$0x3] }
   0xe   :  { %v36_v52 = vperm.slane %v34_v51, 0  ;;  %v37_v53 = vperm.slane %v34_v51, 1 }
  0x10   :  { %123 = vmatpush.bf16.msra.mxu0 %v240_v22 }
  0x11   :  { %136 = vmatpush.bf16.msra.mxu1 %v244_v24  ;;  %v196_v24 = vlaneseq }
  0x13   :  { %vm198_vm3 = vcmp.lt.s32.totalorder %v196_v24, 512 }
  0x14   :  { %124 = vmatpush.bf16.msra.mxu0 %v232_v30 }
  0x15   :  { %137 = vmatpush.bf16.msra.mxu1 %v236_v31 }
  0x18   :  { %125 = vmatpush.bf16.msra.mxu0 %v224_v36 }
  0x19   :  { %138 = vmatpush.bf16.msra.mxu1 %v228_v37 }
  0x1c   :  { %126 = vmatpush.bf16.msra.mxu0 %v216_v42 }
  0x1d   :  { %139 = vmatpush.bf16.msra.mxu1 %v220_v43 }
  0x20   :  { %127 = vmatpush.bf16.msra.mxu0 %v208_v48 }
  0x21   :  { %140 = vmatpush.bf16.msra.mxu1 %v212_v49 }
  0x23   :  { %128 = vmatmul.bf16.vlgmr.msra.gmra.mxu0 %v17_v50 }
  0x24   :  { %141 = vmatmul.bf16.vlgmr.msra.gmra.mxu1 %v17_v50 }
  0x79   :  { %v150_v55 = vpop.permute.xlu0 %149 }
  0xa0   :  { %v129_v54 = vpop.f32.mrf.mxu0 }
  0xa1   :  { %v130_v56 = vadd.f32 %v129_v54, %v36_v52  ;;  %v142_v57 = vpop.f32.mrf.mxu1 }
  0xa2   :  { %v143_v58 = vadd.f32 %v142_v57, %v37_v53 }
  0xa3   :  { %v166_v59 = vmul.f32 %v130_v56, %v130_v56  ;;  %v152_v60 = vmul.f32 %v150_v55, %v130_v56 }
  0xa4   :  { %v167_v61 = vmul.f32 %v143_v58, %v143_v58  ;;  %v153_v62 = vmul.f32 %v150_v55, %v143_v58 }
  0xa5   :  { %v154_v63 = vrot.slane %v152_v60, 4  ;;  %v168_v0 = vmul.f32 %v166_v59, %v150_v55 }
  0xa6   :  { %v160_v1 = vrot.slane %v153_v62, 4  ;;  %v169_v2 = vmul.f32 %v167_v61, %v150_v55 }
  0xa7   :  { %v155_v3 = vadd.f32 %v154_v63, %v152_v60  ;;  %v170_v4 = vrot.slane %v168_v0, 4 }
  0xa8   :  { %v161_v5 = vadd.f32 %v160_v1, %v153_v62  ;;  %v176_v6 = vrot.slane %v169_v2, 4  ;;  %v131_v7 = vpop.f32.mrf.mxu0 }
  0xa9   :  { %v156_v8 = vrot.slane %v155_v3, 2  ;;  %v171_v9 = vadd.f32 %v170_v4, %v168_v0  ;;  %v144_v10 = vpop.f32.mrf.mxu1 }
  0xaa   :  { %v162_v11 = vrot.slane %v161_v5, 2  ;;  %v177_v12 = vadd.f32 %v176_v6, %v169_v2 }
  0xab   :  { %v172_v13 = vrot.slane %v171_v9, 2  ;;  %v157_v14 = vadd.f32 %v156_v8, %v155_v3 }
  0xac   :  { %v163_v15 = vadd.f32 %v162_v11, %v161_v5  ;;  %v178_v16 = vrot.slane %v177_v12, 2 }
  0xad   :  { %v173_v17 = vadd.f32 %v172_v13, %v171_v9  ;;  %v158_v21 = vrot.slane %v157_v14, 1 }
  0xae   :  { %v164_v18 = vrot.slane %v163_v15, 1  ;;  %v179_v19 = vadd.f32 %v178_v16, %v177_v12 }
  0xaf   :  { %v174_v20 = vrot.slane %v173_v17, 1  ;;  %v159_v29 = vadd.f32 %v158_v21, %v157_v14 }
  0xb0   :  { %v165_v22 = vadd.f32 %v164_v18, %v163_v15  ;;  %v180_v23 = vrot.slane %v179_v19, 1 }
  0xb1   :  { %v175_v25 = vadd.f32 %v174_v20, %v173_v17 }
  0xb2   :  { %v181_v26 = vadd.f32 %v180_v23, %v179_v19  ;;  %v186_v27 = vrot.slane %v165_v22, 7 }
  0xb3   :  { %v187_v28 = vrot.slane %v175_v25, 6 }
  0xb4   :  { %v188_v30 = vrot.slane %v181_v26, 5  ;;  %v190_v31 = vsel %vm189_vm0, %v159_v29, %v186_v27 }
  0xb6   :  { %v192_v32 = vsel %vm191_vm1, %v187_v28, %v188_v30 }
  0xb7   :  { %v194_v33 = vsel %vm193_vm2, %v190_v31, %v192_v32 }
  0xb8   :  { %200 = vst.msk [vmem:[%s425_s4] sm:$0xf] %vm198_vm3, %v194_v33 }

</bundles_post_ra>
